<compile_context>
chip_gen: v7x
topology: tpu7x:2x2x1
jax: 0.10.0
libtpu: 0.0.40
codegen_flags: <defaults>
</compile_context>

<pallas_src>
import jax
import jax.numpy as jnp
from jax.experimental import pallas as pl
from jax.experimental.pallas import tpu as pltpu

HIDDEN = 256
DEFAULT_TILE_B = 2048


def _round_up(x, m):
    return ((x + m - 1) // m) * m


# ----------------------------- Pallas kernel -------------------------------
def discriminator_kernel(x_ref, w1_ref, b1_ref, w2_ref, b2_ref, w3_ref, b3_ref,
                         o_ref):
    """One batch tile, transposed layout: activations are (features, TILE_B)."""
    x = x_ref[...]                                               # (in_dim, TB) bf16

    # fc1 + LeakyReLU(0.2)          (Dropout = identity, eval mode)
    h1 = jnp.dot(w1_ref[...], x, preferred_element_type=jnp.float32)  # (256, TB) f32
    h1 = h1 + b1_ref[...]                                        # (256,1) lane-bcast
    h1 = jnp.where(h1 > 0, h1, 0.2 * h1)

    # fc2 + LeakyReLU(0.2)
    h2 = jnp.dot(w2_ref[...], h1.astype(jnp.bfloat16),
                 preferred_element_type=jnp.float32)             # (256, TB) f32
    h2 = h2 + b2_ref[...]
    h2 = jnp.where(h2 > 0, h2, 0.2 * h2)

    # fc3 as weighted sublane reduction (avoids an M=1 MXU matmul) + Sigmoid.
    logit = jnp.sum(h2 * w3_ref[...], axis=0, keepdims=True) + b3_ref[...]  # (1, TB)
    o_ref[...] = jax.nn.sigmoid(logit)


# ------------------------------- wrapper ------------------------------------
def discriminator_forward(x, params, *, tile_b=DEFAULT_TILE_B):
    """x: any shape whose trailing elements flatten to (-1, in_dim)."""
    w1, b1, w2, b2, w3, b3 = params
    hidden, in_dim = w1.shape

    x2d = x.reshape(-1, in_dim).astype(jnp.float32)              # i.view(-1, in_dim)
    batch = x2d.shape[0]

    # Lane-aligned batch tile; pad batch to a multiple of it.
    tb = min(tile_b, _round_up(batch, 128))
    b_pad = _round_up(batch, tb)
    num_tiles = b_pad // tb

    x_pad = jnp.pad(x2d, ((0, b_pad - batch), (0, 0)))
    x_t = x_pad.T.astype(jnp.bfloat16)                           # (in_dim, b_pad)

    # Kernel-side dtypes / layouts (weights stay in PyTorch (out, in) layout).
    w1b = w1.astype(jnp.bfloat16)                                # (256, in_dim)
    w2b = w2.astype(jnp.bfloat16)                                # (256, 256)
    b1c = b1.reshape(hidden, 1).astype(jnp.float32)
    b2c = b2.reshape(hidden, 1).astype(jnp.float32)
    w3c = w3.reshape(hidden, 1).astype(jnp.float32)              # column vector
    b3c = b3.reshape(1, 1).astype(jnp.float32)

    def resident(shape):
        return pl.BlockSpec(shape, lambda i: (0, 0))             # fetched once

    flops = 2 * b_pad * (in_dim * hidden + hidden * hidden + hidden)
    bytes_accessed = (x_t.size * 2 + w1b.size * 2 + w2b.size * 2
                      + (b1c.size + b2c.size + w3c.size + b3c.size) * 4
                      + b_pad * 4)

    out = pl.pallas_call(
        discriminator_kernel,
        out_shape=jax.ShapeDtypeStruct((1, b_pad), jnp.float32),
        grid_spec=pltpu.PrefetchScalarGridSpec(
            num_scalar_prefetch=0,
            grid=(num_tiles,),
            in_specs=[
                pl.BlockSpec((in_dim, tb), lambda i: (0, i)),    # streamed x tile
                resident((hidden, in_dim)),                      # w1
                resident((hidden, 1)),                           # b1
                resident((hidden, hidden)),                      # w2
                resident((hidden, 1)),                           # b2
                resident((hidden, 1)),                           # w3
                resident((1, 1)),                                # b3
            ],
            out_specs=pl.BlockSpec((1, tb), lambda i: (0, i)),   # lane-dense logits
        ),
        compiler_params=pltpu.CompilerParams(
            dimension_semantics=("parallel",),
            vmem_limit_bytes=32 * 1024 * 1024,
        ),
        cost_estimate=pl.CostEstimate(
            flops=flops, transcendentals=b_pad, bytes_accessed=bytes_accessed),
    )(x_t, w1b, b1c, w2b, b2c, w3c, b3c)

    return out.reshape(-1)[:batch]                               # o.view(-1)


# -------------------------- parameter construction --------------------------
def init_params(key, in_dim, hidden=HIDDEN):
    """PyTorch nn.Linear-style init; weights kept in (out, in) layout, f32."""
    ks = jax.random.split(key, 6)

    def linear(kw, kb, fan_in, fan_out):
        bound = 1.0 / jnp.sqrt(fan_in)
        w = jax.random.uniform(kw, (fan_out, fan_in), jnp.float32, -bound, bound)
        b = jax.random.uniform(kb, (fan_out,), jnp.float32, -bound, bound)
        return w, b

    w1, b1 = linear(ks[0], ks[1], in_dim, hidden)
    w2, b2 = linear(ks[2], ks[3], hidden, hidden)
    w3, b3 = linear(ks[4], ks[5], hidden, 1)
    return (w1, b1, w2, b2, w3, b3)


# ------------------------------ reference -----------------------------------
def discriminator_ref(x, params):
    w1, b1, w2, b2, w3, b3 = params
    in_dim = w1.shape[1]
    h = x.reshape(-1, in_dim).astype(jnp.float32)
    h = h @ w1.T + b1
    h = jnp.where(h > 0, h, 0.2 * h)
    h = h @ w2.T + b2
    h = jnp.where(h > 0, h, 0.2 * h)
    h = h @ w3.T + b3
    return jax.nn.sigmoid(h).reshape(-1)


if __name__ == "__main__":
    # HyperParam: feature_dim=16, pac_size=2  ->  in_dim = 32
    feature_dim, pac_size = 16, 2
    in_dim = feature_dim * pac_size

    key = jax.random.PRNGKey(0)
    k_x, k_p = jax.random.split(key)

    # 4 packed samples, each pac of 2 feature vectors -> view(-1, 32) = (4, 32)
    x = jax.random.normal(k_x, (4, pac_size, feature_dim), jnp.float32)
    params = init_params(k_p, in_dim)

    out = discriminator_forward(x, params)
    jax.block_until_ready(out)

    ref = discriminator_ref(x, params)
    assert out.shape == (4,), out.shape
    # bf16 matmul operands (f32 accumulate) -> relaxed tolerance vs f32 ref.
    assert jnp.allclose(out, ref, atol=1e-2, rtol=1e-2), (out, ref)

    print("KERNEL_OK")
</pallas_src>

<mosaic_0001>
module attributes {stable_mosaic.version = 11 : i64} {
  func.func @discriminator_kernel(%arg0: i32, %arg1: memref<32x128xbf16, #tpu.memory_space<vmem>>, %arg2: memref<256x32xbf16, #tpu.memory_space<vmem>>, %arg3: memref<256x1xf32, #tpu.memory_space<vmem>>, %arg4: memref<256x256xbf16, #tpu.memory_space<vmem>>, %arg5: memref<256x1xf32, #tpu.memory_space<vmem>>, %arg6: memref<256x1xf32, #tpu.memory_space<vmem>>, %arg7: memref<1x1xf32, #tpu.memory_space<vmem>>, %arg8: memref<1x128xf32, #tpu.memory_space<vmem>>) attributes {dimension_semantics = [#tpu.dimension_semantics<parallel>], iteration_bounds = array<i64: 1>, scalar_prefetch = 0 : i64, scratch_operands = 0 : i64, tpu.core_type = #tpu.core_type<tc>, window_params = [{transform_indices = @transform_0, window_bounds = array<i64: 32, 128>}, {pipeline_mode = #tpu.pipeline_mode<synchronous>, transform_indices = @transform_1, window_bounds = array<i64: 256, 32>}, {pipeline_mode = #tpu.pipeline_mode<synchronous>, transform_indices = @transform_2, window_bounds = array<i64: 256, 1>}, {pipeline_mode = #tpu.pipeline_mode<synchronous>, transform_indices = @transform_3, window_bounds = array<i64: 256, 256>}, {pipeline_mode = #tpu.pipeline_mode<synchronous>, transform_indices = @transform_4, window_bounds = array<i64: 256, 1>}, {pipeline_mode = #tpu.pipeline_mode<synchronous>, transform_indices = @transform_5, window_bounds = array<i64: 256, 1>}, {pipeline_mode = #tpu.pipeline_mode<synchronous>, transform_indices = @transform_6, window_bounds = array<i64: 1, 1>}, {transform_indices = @transform_7, window_bounds = array<i64: 1, 128>}]} {
    %c0 = arith.constant 0 : index
    %c0_0 = arith.constant 0 : index
    %0 = vector.load %arg1[%c0, %c0_0] : memref<32x128xbf16, #tpu.memory_space<vmem>>, vector<32x128xbf16>
    %c0_1 = arith.constant 0 : index
    %c0_2 = arith.constant 0 : index
    %1 = vector.load %arg2[%c0_1, %c0_2] : memref<256x32xbf16, #tpu.memory_space<vmem>>, vector<256x32xbf16>
    %cst = arith.constant dense<0.000000e+00> : vector<256x128xf32>
    %2 = tpu.matmul %1, %0, %cst {dimension_numbers = #tpu.dot_dimension_numbers<[1], [0], [0], [1], [0, 0, 1, 1], [], []>} : vector<256x32xbf16>, vector<32x128xbf16>, vector<256x128xf32> -> vector<256x128xf32>
    %c0_3 = arith.constant 0 : index
    %c0_4 = arith.constant 0 : index
    %3 = vector.load %arg3[%c0_3, %c0_4] : memref<256x1xf32, #tpu.memory_space<vmem>>, vector<256x1xf32>
    %4 = vector.broadcast %3 : vector<256x1xf32> to vector<256x128xf32>
    %5 = arith.addf %2, %4 : vector<256x128xf32>
    %cst_5 = arith.constant 0.000000e+00 : f32
    %6 = vector.broadcast %cst_5 : f32 to vector<256x128xf32>
    %7 = arith.cmpf ogt, %5, %6 : vector<256x128xf32>
    %cst_6 = arith.constant 2.000000e-01 : f32
    %8 = vector.broadcast %cst_6 : f32 to vector<256x128xf32>
    %9 = arith.mulf %8, %5 : vector<256x128xf32>
    %10 = arith.select %7, %5, %9 : vector<256x128xi1>, vector<256x128xf32>
    %c0_7 = arith.constant 0 : index
    %c0_8 = arith.constant 0 : index
    %11 = vector.load %arg4[%c0_7, %c0_8] : memref<256x256xbf16, #tpu.memory_space<vmem>>, vector<256x256xbf16>
    %12 = arith.truncf %10 : vector<256x128xf32> to vector<256x128xbf16>
    %cst_9 = arith.constant dense<0.000000e+00> : vector<256x128xf32>
    %13 = tpu.matmul %11, %12, %cst_9 {dimension_numbers = #tpu.dot_dimension_numbers<[1], [0], [0], [1], [0, 0, 1, 1], [], []>} : vector<256x256xbf16>, vector<256x128xbf16>, vector<256x128xf32> -> vector<256x128xf32>
    %c0_10 = arith.constant 0 : index
    %c0_11 = arith.constant 0 : index
    %14 = vector.load %arg5[%c0_10, %c0_11] : memref<256x1xf32, #tpu.memory_space<vmem>>, vector<256x1xf32>
    %15 = vector.broadcast %14 : vector<256x1xf32> to vector<256x128xf32>
    %16 = arith.addf %13, %15 : vector<256x128xf32>
    %cst_12 = arith.constant 0.000000e+00 : f32
    %17 = vector.broadcast %cst_12 : f32 to vector<256x128xf32>
    %18 = arith.cmpf ogt, %16, %17 : vector<256x128xf32>
    %cst_13 = arith.constant 2.000000e-01 : f32
    %19 = vector.broadcast %cst_13 : f32 to vector<256x128xf32>
    %20 = arith.mulf %19, %16 : vector<256x128xf32>
    %21 = arith.select %18, %16, %20 : vector<256x128xi1>, vector<256x128xf32>
    %c0_14 = arith.constant 0 : index
    %c0_15 = arith.constant 0 : index
    %22 = vector.load %arg6[%c0_14, %c0_15] : memref<256x1xf32, #tpu.memory_space<vmem>>, vector<256x1xf32>
    %23 = vector.broadcast %22 : vector<256x1xf32> to vector<256x128xf32>
    %24 = arith.mulf %21, %23 : vector<256x128xf32>
    %cst_16 = arith.constant dense<0.000000e+00> : vector<128xf32>
    %25 = vector.multi_reduction <add>, %24, %cst_16 [0] : vector<256x128xf32> to vector<128xf32>
    %26 = vector.shape_cast %25 : vector<128xf32> to vector<1x128xf32>
    %c0_17 = arith.constant 0 : index
    %c0_18 = arith.constant 0 : index
    %27 = vector.load %arg7[%c0_17, %c0_18] : memref<1x1xf32, #tpu.memory_space<vmem>>, vector<1x1xf32>
    %28 = vector.broadcast %27 : vector<1x1xf32> to vector<1x128xf32>
    %29 = arith.addf %26, %28 : vector<1x128xf32>
    %30 = arith.negf %29 : vector<1x128xf32>
    %31 = math.exp %30 : vector<1x128xf32>
    %cst_19 = arith.constant 1.000000e+00 : f32
    %32 = vector.broadcast %cst_19 : f32 to vector<1x128xf32>
    %33 = arith.addf %32, %31 : vector<1x128xf32>
    %34 = arith.divf %32, %33 : vector<1x128xf32>
    %c0_20 = arith.constant 0 : index
    %c0_21 = arith.constant 0 : index
    %35 = vector.load %arg8[%c0_20, %c0_21] : memref<1x128xf32, #tpu.memory_space<vmem>>, vector<1x128xf32>
    tpu.vector_store %arg8[%c0_20, %c0_21], %34 {strides = array<i32>} : memref<1x128xf32, #tpu.memory_space<vmem>>, vector<1x128xf32>,
    return
  }
  func.func @transform_0(%arg0: i32) -> (i32, i32) {
    %c0_i32 = arith.constant 0 : i32
    %c0_i32_0 = arith.constant 0 : i32
    return %c0_i32, %arg0 : i32, i32
  }
  func.func @transform_1(%arg0: i32) -> (i32, i32) {
    %c0_i32 = arith.constant 0 : i32
    %c0_i32_0 = arith.constant 0 : i32
    %c0_i32_1 = arith.constant 0 : i32
    return %c0_i32, %c0_i32_0 : i32, i32
  }
  func.func @transform_2(%arg0: i32) -> (i32, i32) {
    %c0_i32 = arith.constant 0 : i32
    %c0_i32_0 = arith.constant 0 : i32
    %c0_i32_1 = arith.constant 0 : i32
    return %c0_i32, %c0_i32_0 : i32, i32
  }
  func.func @transform_3(%arg0: i32) -> (i32, i32) {
    %c0_i32 = arith.constant 0 : i32
    %c0_i32_0 = arith.constant 0 : i32
    %c0_i32_1 = arith.constant 0 : i32
    return %c0_i32, %c0_i32_0 : i32, i32
  }
  func.func @transform_4(%arg0: i32) -> (i32, i32) {
    %c0_i32 = arith.constant 0 : i32
    %c0_i32_0 = arith.constant 0 : i32
    %c0_i32_1 = arith.constant 0 : i32
    return %c0_i32, %c0_i32_0 : i32, i32
  }
  func.func @transform_5(%arg0: i32) -> (i32, i32) {
    %c0_i32 = arith.constant 0 : i32
    %c0_i32_0 = arith.constant 0 : i32
    %c0_i32_1 = arith.constant 0 : i32
    return %c0_i32, %c0_i32_0 : i32, i32
  }
  func.func @transform_6(%arg0: i32) -> (i32, i32) {
    %c0_i32 = arith.constant 0 : i32
    %c0_i32_0 = arith.constant 0 : i32
    %c0_i32_1 = arith.constant 0 : i32
    return %c0_i32, %c0_i32_0 : i32, i32
  }
  func.func @transform_7(%arg0: i32) -> (i32, i32) {
    %c0_i32 = arith.constant 0 : i32
    %c0_i32_0 = arith.constant 0 : i32
    return %c0_i32, %arg0 : i32, i32
  }
}

</mosaic_0001>

<bundles_post_ra>
// kernel: tpu_custom_call.1
= control target key start
LH: loop header
LB: loop body
LE: loop exit
PB: predicated region body
PF: predicated region fallthrough
CT: control target
= control target key end

     0   :  { %s2725_s0 = inlined_call_operand.vmem [shape: bf16[32,128], index: 0, kind: input, shape index: {}]   ;;  %s2726_s1 = inlined_call_operand.vmem [shape: bf16[256,32], index: 1, kind: input, shape index: {}]   ;;  %s2727_s2 = inlined_call_operand.vmem [shape: f32[256,1], index: 2, kind: input, shape index: {}]   ;;  %s2728_s3 = inlined_call_operand.vmem [shape: bf16[256,256], index: 3, kind: input, shape index: {}]   ;;  %s2729_s4 = inlined_call_operand.vmem [shape: f32[256,1], index: 4, kind: input, shape index: {}]   ;;  %s2730_s5 = inlined_call_operand.vmem [shape: f32[256,1], index: 5, kind: input, shape index: {}]   ;;  %s2731_s6 = inlined_call_operand.<no memory space> [shape: f32[1,1], index: 6, kind: input, shape index: {}]   ;;  %s2732_s7 = inlined_call_operand.hbm [shape: f32[1,128], index: 7, kind: output, shape index: {}]  }
   0x1   :  { %v12_v0 = vstv %s2731_s6 }
   0x2   :  { %13 = vst [vmem:[#allocation2] sm:$0x1] %v12_v0 }
   0x3   :  { %v82_v1 = vld [vmem:[%s2727_s2 + $0x80] sm:$0xff]  ;;  %v1953_v3 = vmov 0   ;;  %v83_v5 = vld [vmem:[%s2727_s2 + $0x88] sm:$0xff]  ;;  %vm350_vm0 = vcmask 261120   ;;  %v84_v9 = vld [vmem:[%s2727_s2 + $0x90] sm:$0xff] }
   0x4   :  { %v66_v2 = vld [vmem:[%s2727_s2] sm:$0xff]  ;;  %1858 = vset.pattern.permute.xlu1 %v1953_v3  ;;  %1857 = vset.pattern.permute.xlu0 %v1953_v3  ;;  %v67_v6 = vld [vmem:[%s2727_s2 + $0x8] sm:$0xff]  ;;  %v85_v10 = vld [vmem:[%s2727_s2 + $0x98] sm:$0xff] }
   0x5   :  { %v1859_v4 = vld [vmem:[%s2725_s0] sm:$0xff]   ;;  %180 = vperm.xlu0 %1857, %v82_v1   ;;  %100 = vperm.xlu1 %1858, %v66_v2   ;;  %v1860_v7 = vld [vmem:[%s2725_s0 + $0x8] sm:$0xff]   ;;  %v1863_v12 = vld [vmem:[%s2726_s1 + $0x10] sm:$0xff]  }
   0x6   :  { %1803 = vmatprep.subr.bf16.mxu0 %v1859_v4  ;;  %v1861_v8 = vld [vmem:[%s2726_s1] sm:$0xff]   ;;  %v1862_v11 = vld [vmem:[%s2726_s1 + $0x8] sm:$0xff]   ;;  %v68_v13 = vld [vmem:[%s2727_s2 + $0x10] sm:$0xff] }
   0x7   :  { %1804 = vmatpush3.bf16.msra.mxu0 %v1859_v4  ;;  %1807 = vmatprep.mubr.msk.bf16.mxu0 %vm350_vm0, %v1861_v8  ;;  %v69_v14 = vld [vmem:[%s2727_s2 + $0x18] sm:$0xff]  ;;  %v86_v15 = vld [vmem:[%s2727_s2 + $0xa0] sm:$0xff]  ;;  %v87_v16 = vld [vmem:[%s2727_s2 + $0xa8] sm:$0xff] }
   0x8   :  { %1805 = vmatprep.subr.bf16.mxu0 %v1860_v7  ;;  %v1864_v17 = vld [vmem:[%s2726_s1 + $0x18] sm:$0xff]   ;;  %v1865_v18 = vld [vmem:[%s2726_s1 + $0x20] sm:$0xff]   ;;  %v71_v20 = vld [vmem:[%s2727_s2 + $0x28] sm:$0xff] }
   0x9   :  { %185 = vperm.xlu0 %1857, %v83_v5   ;;  %105 = vperm.xlu1 %1858, %v67_v6   ;;  %v70_v19 = vld [vmem:[%s2727_s2 + $0x20] sm:$0xff]  ;;  %v88_v21 = vld [vmem:[%s2727_s2 + $0xb0] sm:$0xff]  ;;  %v89_v22 = vld [vmem:[%s2727_s2 + $0xb8] sm:$0xff] }
   0xa   :  { %v1866_v23 = vld [vmem:[%s2726_s1 + $0x28] sm:$0xff]   ;;  %v1867_v24 = vld [vmem:[%s2726_s1 + $0x30] sm:$0xff]   ;;  %v73_v26 = vld [vmem:[%s2727_s2 + $0x38] sm:$0xff] }
   0xb   :  { %1806 = vmatpush3.bf16.msra.mxu0 %v1860_v7  ;;  %v72_v25 = vld [vmem:[%s2727_s2 + $0x30] sm:$0xff]  ;;  %v90_v27 = vld [vmem:[%s2727_s2 + $0xc0] sm:$0xff]  ;;  %v91_v28 = vld [vmem:[%s2727_s2 + $0xc8] sm:$0xff] }
   0xc   :  { %v1868_v29 = vld [vmem:[%s2726_s1 + $0x38] sm:$0xff]   ;;  %v1869_v30 = vld [vmem:[%s2726_s1 + $0x40] sm:$0xff]   ;;  %v75_v32 = vld [vmem:[%s2727_s2 + $0x48] sm:$0xff] }
   0xd   :  { %190 = vperm.xlu0 %1857, %v84_v9   ;;  %195 = vperm.xlu1 %1858, %v85_v10   ;;  %v74_v31 = vld [vmem:[%s2727_s2 + $0x40] sm:$0xff]  ;;  %v92_v33 = vld [vmem:[%s2727_s2 + $0xd0] sm:$0xff]  ;;  %v93_v34 = vld [vmem:[%s2727_s2 + $0xd8] sm:$0xff] }
   0xe   :  { %1808 = vmatmul.mubr.msk.bf16.vlgmr.msra.gmra.mrb[0].mxu0 %vm350_vm0, %v1862_v11  ;;  %v1870_v35 = vld [vmem:[%s2726_s1 + $0x48] sm:$0xff]   ;;  %v1871_v36 = vld [vmem:[%s2726_s1 + $0x50] sm:$0xff]   ;;  %v77_v38 = vld [vmem:[%s2727_s2 + $0x58] sm:$0xff] }
   0xf   :  { %1811 = vmatprep.mubr.msk.bf16.mxu0 %vm350_vm0, %v1863_v12  ;;  %v76_v37 = vld [vmem:[%s2727_s2 + $0x50] sm:$0xff]  ;;  %v94_v39 = vld [vmem:[%s2727_s2 + $0xe0] sm:$0xff]  ;;  %v95_v40 = vld [vmem:[%s2727_s2 + $0xe8] sm:$0xff] }
  0x10   :  { %v1872_v41 = vld [vmem:[%s2726_s1 + $0x58] sm:$0xff]   ;;  %v1873_v42 = vld [vmem:[%s2726_s1 + $0x60] sm:$0xff]   ;;  %v79_v44 = vld [vmem:[%s2727_s2 + $0x68] sm:$0xff] }
  0x11   :  { %110 = vperm.xlu0 %1857, %v68_v13   ;;  %115 = vperm.xlu1 %1858, %v69_v14   ;;  %v78_v43 = vld [vmem:[%s2727_s2 + $0x60] sm:$0xff]  ;;  %v96_v45 = vld [vmem:[%s2727_s2 + $0xf0] sm:$0xff]  ;;  %v97_v46 = vld [vmem:[%s2727_s2 + $0xf8] sm:$0xff] }
  0x12   :  { %v1874_v47 = vld [vmem:[%s2726_s1 + $0x68] sm:$0xff]   ;;  %v1875_v48 = vld [vmem:[%s2726_s1 + $0x70] sm:$0xff]   ;;  %v81_v50 = vld [vmem:[%s2727_s2 + $0x78] sm:$0xff] }
  0x13   :  { %v80_v49 = vld [vmem:[%s2727_s2 + $0x70] sm:$0xff] }
  0x15   :  { %200 = vperm.xlu0 %1857, %v86_v15   ;;  %205 = vperm.xlu1 %1858, %v87_v16  }
  0x16   :  { %1812 = vmatmul.mubr.msk.bf16.gmra.mrb[4].mxu0 %vm350_vm0, %v1864_v17 }
  0x17   :  { %1815 = vmatprep.mubr.msk.bf16.mxu0 %vm350_vm0, %v1865_v18 }
  0x19   :  { %120 = vperm.xlu0 %1857, %v70_v19   ;;  %125 = vperm.xlu1 %1858, %v71_v20  }
  0x1d   :  { %210 = vperm.xlu0 %1857, %v88_v21   ;;  %215 = vperm.xlu1 %1858, %v89_v22  }
  0x1e   :  { %1816 = vmatmul.mubr.msk.bf16.gmra.mrb[8].mxu0 %vm350_vm0, %v1866_v23 }
  0x1f   :  { %1819 = vmatprep.mubr.msk.bf16.mxu0 %vm350_vm0, %v1867_v24 }
  0x21   :  { %130 = vperm.xlu0 %1857, %v72_v25   ;;  %135 = vperm.xlu1 %1858, %v73_v26  }
  0x25   :  { %220 = vperm.xlu0 %1857, %v90_v27   ;;  %225 = vperm.xlu1 %1858, %v91_v28  }
  0x26   :  { %1820 = vmatmul.mubr.msk.bf16.gmra.mrb[12].mxu0 %vm350_vm0, %v1868_v29 }
  0x27   :  { %1823 = vmatprep.mubr.msk.bf16.mxu0 %vm350_vm0, %v1869_v30 }
  0x29   :  { %140 = vperm.xlu0 %1857, %v74_v31   ;;  %145 = vperm.xlu1 %1858, %v75_v32  }
  0x2d   :  { %230 = vperm.xlu0 %1857, %v92_v33   ;;  %235 = vperm.xlu1 %1858, %v93_v34  }
  0x2e   :  { %1824 = vmatmul.mubr.msk.bf16.gmra.mrb[16].mxu0 %vm350_vm0, %v1870_v35 }
  0x2f   :  { %1827 = vmatprep.mubr.msk.bf16.mxu0 %vm350_vm0, %v1871_v36 }
  0x31   :  { %150 = vperm.xlu0 %1857, %v76_v37   ;;  %155 = vperm.xlu1 %1858, %v77_v38  }
  0x35   :  { %240 = vperm.xlu0 %1857, %v94_v39   ;;  %245 = vperm.xlu1 %1858, %v95_v40  }
  0x36   :  { %1828 = vmatmul.mubr.msk.bf16.gmra.mrb[20].mxu0 %vm350_vm0, %v1872_v41 }
  0x37   :  { %1831 = vmatprep.mubr.msk.bf16.mxu0 %vm350_vm0, %v1873_v42 }
  0x39   :  { %160 = vperm.xlu0 %1857, %v78_v43   ;;  %165 = vperm.xlu1 %1858, %v79_v44  }
  0x3d   :  { %250 = vperm.xlu0 %1857, %v96_v45   ;;  %255 = vperm.xlu1 %1858, %v97_v46  }
  0x3e   :  { %1832 = vmatmul.mubr.msk.bf16.gmra.mrb[24].mxu0 %vm350_vm0, %v1874_v47 }
  0x3f   :  { %1835 = vmatprep.mubr.msk.bf16.mxu0 %vm350_vm0, %v1875_v48 }
  0x40   :  { %14 = vsyncpa [#allocation4], 0  ;;  %v704_v51 = vld [vmem:[%s2729_s4] sm:$0xff]  ;;  %v705_v52 = vld [vmem:[%s2729_s4 + $0x8] sm:$0xff] }
  0x41   :  { %170 = vperm.xlu0 %1857, %v80_v49   ;;  %175 = vperm.xlu1 %1858, %v81_v50   ;;  %v1876_v53 = vld [vmem:[%s2726_s1 + $0x78] sm:$0xff]   ;;  %v706_v54 = vld [vmem:[%s2729_s4 + $0x10] sm:$0xff]  ;;  %v708_v56 = vld [vmem:[%s2729_s4 + $0x20] sm:$0xff] }
  0x42   :  { %v707_v55 = vld [vmem:[%s2729_s4 + $0x18] sm:$0xff]  ;;  %v709_v57 = vld [vmem:[%s2729_s4 + $0x28] sm:$0xff]  ;;  %v710_v58 = vld [vmem:[%s2729_s4 + $0x30] sm:$0xff] }
  0x43   :  { %v711_v59 = vld [vmem:[%s2729_s4 + $0x38] sm:$0xff]  ;;  %v712_v60 = vld [vmem:[%s2729_s4 + $0x40] sm:$0xff]  ;;  %v713_v61 = vld [vmem:[%s2729_s4 + $0x48] sm:$0xff] }
  0x44   :  { %v714_v62 = vld [vmem:[%s2729_s4 + $0x50] sm:$0xff]  ;;  %v715_v63 = vld [vmem:[%s2729_s4 + $0x58] sm:$0xff]  ;;  %v716_v0 = vld [vmem:[%s2729_s4 + $0x60] sm:$0xff] }
  0x45   :  { %738 = vperm.xlu0 %1857, %v704_v51   ;;  %743 = vperm.xlu1 %1858, %v705_v52   ;;  %v717_v1 = vld [vmem:[%s2729_s4 + $0x68] sm:$0xff]  ;;  %v718_v2 = vld [vmem:[%s2729_s4 + $0x70] sm:$0xff]  ;;  %v719_v3 = vld [vmem:[%s2729_s4 + $0x78] sm:$0xff] }
  0x46   :  { %1836 = vmatmul.mubr.msk.bf16.gmra.mrb[28].mxu0 %vm350_vm0, %v1876_v53  ;;  %v720_v4 = vld [vmem:[%s2729_s4 + $0x80] sm:$0xff]  ;;  %v721_v5 = vld [vmem:[%s2729_s4 + $0x88] sm:$0xff]  ;;  %v722_v6 = vld [vmem:[%s2729_s4 + $0x90] sm:$0xff] }
  0x47   :  { %v723_v7 = vld [vmem:[%s2729_s4 + $0x98] sm:$0xff]  ;;  %v724_v8 = vld [vmem:[%s2729_s4 + $0xa0] sm:$0xff]  ;;  %v725_v9 = vld [vmem:[%s2729_s4 + $0xa8] sm:$0xff] }
  0x48   :  { %v726_v10 = vld [vmem:[%s2729_s4 + $0xb0] sm:$0xff]  ;;  %v1313_v11 = vld [vmem:[%s2730_s5] sm:$0xff]  ;;  %v1314_v12 = vld [vmem:[%s2730_s5 + $0x8] sm:$0xff] }
  0x49   :  { %748 = vperm.xlu0 %1857, %v706_v54   ;;  %753 = vperm.xlu1 %1858, %v707_v55   ;;  %v1315_v13 = vld [vmem:[%s2730_s5 + $0x10] sm:$0xff]  ;;  %v1316_v14 = vld [vmem:[%s2730_s5 + $0x18] sm:$0xff]  ;;  %v1317_v15 = vld [vmem:[%s2730_s5 + $0x20] sm:$0xff] }
  0x4a   :  { %v1318_v16 = vld [vmem:[%s2730_s5 + $0x28] sm:$0xff]  ;;  %v1319_v17 = vld [vmem:[%s2730_s5 + $0x30] sm:$0xff]  ;;  %v1320_v18 = vld [vmem:[%s2730_s5 + $0x38] sm:$0xff] }
  0x4b   :  { %v1321_v19 = vld [vmem:[%s2730_s5 + $0x40] sm:$0xff]  ;;  %v1322_v20 = vld [vmem:[%s2730_s5 + $0x48] sm:$0xff]  ;;  %v1323_v21 = vld [vmem:[%s2730_s5 + $0x50] sm:$0xff] }
  0x4c   :  { %v1324_v22 = vld [vmem:[%s2730_s5 + $0x58] sm:$0xff]  ;;  %v1325_v23 = vld [vmem:[%s2730_s5 + $0x60] sm:$0xff]  ;;  %v1326_v24 = vld [vmem:[%s2730_s5 + $0x68] sm:$0xff] }
  0x4d   :  { %758 = vperm.xlu0 %1857, %v708_v56   ;;  %763 = vperm.xlu1 %1858, %v709_v57   ;;  %v1327_v25 = vld [vmem:[%s2730_s5 + $0x70] sm:$0xff]  ;;  %v1328_v26 = vld [vmem:[%s2730_s5 + $0x78] sm:$0xff]  ;;  %v1329_v27 = vld [vmem:[%s2730_s5 + $0x80] sm:$0xff] }
  0x4e   :  { %v1330_v28 = vld [vmem:[%s2730_s5 + $0x88] sm:$0xff]  ;;  %v1331_v29 = vld [vmem:[%s2730_s5 + $0x90] sm:$0xff]  ;;  %v1332_v30 = vld [vmem:[%s2730_s5 + $0x98] sm:$0xff] }
  0x4f   :  { %v1333_v31 = vld [vmem:[%s2730_s5 + $0xa0] sm:$0xff]  ;;  %v727_v32 = vld [vmem:[%s2729_s4 + $0xb8] sm:$0xff]  ;;  %v1334_v33 = vld [vmem:[%s2730_s5 + $0xa8] sm:$0xff] }
  0x50   :  { %v728_v34 = vld [vmem:[%s2729_s4 + $0xc0] sm:$0xff]  ;;  %v1335_v35 = vld [vmem:[%s2730_s5 + $0xb0] sm:$0xff]  ;;  %v729_v38 = vld [vmem:[%s2729_s4 + $0xc8] sm:$0xff] }
  0x51   :  { %768 = vperm.xlu0 %1857, %v710_v58   ;;  %773 = vperm.xlu1 %1858, %v711_v59   ;;  %v1336_v39 = vld [vmem:[%s2730_s5 + $0xb8] sm:$0xff]  ;;  %v730_v41 = vld [vmem:[%s2729_s4 + $0xd0] sm:$0xff]  ;;  %v1337_v42 = vld [vmem:[%s2730_s5 + $0xc0] sm:$0xff] }
  0x52   :  { %v731_v44 = vld [vmem:[%s2729_s4 + $0xd8] sm:$0xff]  ;;  %v1338_v45 = vld [vmem:[%s2730_s5 + $0xc8] sm:$0xff]  ;;  %v732_v50 = vld [vmem:[%s2729_s4 + $0xe0] sm:$0xff] }
  0x53   :  { %v1879_v46 = vld [vmem:[%s2728_s3 + $0x4] ss:$8 sps:$4 sm:$0xff]   ;;  %v1882_v48 = vld [vmem:[%s2728_s3 + $0x54] ss:$8 sps:$4 sm:$0xff]  }
  0x54   :  { %1088 = vmatprep.mubr.bf16.mxu0 %v1879_v46  ;;  %v1339_v51 = vld [vmem:[%s2730_s5 + $0xd0] sm:$0xff]  ;;  %1128 = vmatprep.mubr.bf16.mxu1 %v1882_v48  ;;  %v733_v53 = vld [vmem:[%s2729_s4 + $0xe8] sm:$0xff]  ;;  %v1340_v54 = vld [vmem:[%s2730_s5 + $0xd8] sm:$0xff] }
  0x55   :  { %778 = vperm.xlu0 %1857, %v712_v60   ;;  %783 = vperm.xlu1 %1858, %v713_v61   ;;  %v734_v56 = vld [vmem:[%s2729_s4 + $0xf0] sm:$0xff]  ;;  %v1341_v57 = vld [vmem:[%s2730_s5 + $0xe0] sm:$0xff]  ;;  %v735_v60 = vld [vmem:[%s2729_s4 + $0xf8] sm:$0xff] }
  0x56   :  { %v1342_v61 = vld [vmem:[%s2730_s5 + $0xe8] sm:$0xff] }
  0x59   :  { %788 = vperm.xlu0 %1857, %v714_v62   ;;  %793 = vperm.xlu1 %1858, %v715_v63   ;;  %v1343_v63 = vld [vmem:[%s2730_s5 + $0xf0] sm:$0xff] }
  0x5d   :  { %798 = vperm.xlu0 %1857, %v716_v0   ;;  %803 = vperm.xlu1 %1858, %v717_v1   ;;  %v1344_v0 = vld [vmem:[%s2730_s5 + $0xf8] sm:$0xff] }
  0x61   :  { %808 = vperm.xlu0 %1857, %v718_v2   ;;  %813 = vperm.xlu1 %1858, %v719_v3   ;;  %v1574_v2 = vld [vmem:[#allocation2] sm:$0x1] }
  0x65   :  { %818 = vperm.xlu0 %1857, %v720_v4   ;;  %823 = vperm.xlu1 %1858, %v721_v5  }
  0x69   :  { %828 = vperm.xlu0 %1857, %v722_v6   ;;  %833 = vperm.xlu1 %1858, %v723_v7  }
  0x6d   :  { %838 = vperm.xlu0 %1857, %v724_v8   ;;  %843 = vperm.xlu1 %1858, %v725_v9  }
  0x71   :  { %848 = vperm.xlu0 %1857, %v726_v10   ;;  %1347 = vperm.xlu1 %1858, %v1313_v11  }
  0x75   :  { %1352 = vperm.xlu0 %1857, %v1314_v12   ;;  %1357 = vperm.xlu1 %1858, %v1315_v13  }
  0x79   :  { %1362 = vperm.xlu0 %1857, %v1316_v14   ;;  %1367 = vperm.xlu1 %1858, %v1317_v15  }
  0x7d   :  { %1372 = vperm.xlu0 %1857, %v1318_v16   ;;  %1377 = vperm.xlu1 %1858, %v1319_v17  }
  0x81   :  { %1382 = vperm.xlu0 %1857, %v1320_v18   ;;  %1387 = vperm.xlu1 %1858, %v1321_v19  }
  0x84   :  { %v2308_v36 = vpop.permute.xlu0 %180  ;;  %v2310_v37 = vpop.permute.xlu1 %100 }
  0x85   :  { %1392 = vperm.xlu0 %1857, %v1322_v20   ;;  %1397 = vperm.xlu1 %1858, %v1323_v21  }
  0x88   :  { %v2318_v40 = vpop.permute.xlu0 %185  ;;  %v2326_v43 = vpop.permute.xlu1 %105 }
  0x89   :  { %1402 = vperm.xlu0 %1857, %v1324_v22   ;;  %1407 = vperm.xlu1 %1858, %v1325_v23  }
  0x8c   :  { %v2337_v47 = vpop.permute.xlu0 %190  ;;  %v2342_v49 = vpop.permute.xlu1 %195 }
  0x8d   :  { %1412 = vperm.xlu0 %1857, %v1326_v24   ;;  %1417 = vperm.xlu1 %1858, %v1327_v25  }
  0x90   :  { %v111_v52 = vpop.permute.xlu0 %110  ;;  %v116_v55 = vpop.permute.xlu1 %115 }
  0x91   :  { %1422 = vperm.xlu0 %1857, %v1328_v26   ;;  %1427 = vperm.xlu1 %1858, %v1329_v27  }
  0x94   :  { %v2362_v58 = vpop.permute.xlu0 %200  ;;  %v2364_v59 = vpop.permute.xlu1 %205 }
  0x95   :  { %1432 = vperm.xlu0 %1857, %v1330_v28   ;;  %1437 = vperm.xlu1 %1858, %v1331_v29  }
  0x98   :  { %v121_v62 = vpop.permute.xlu0 %120  ;;  %v126_v1 = vpop.permute.xlu1 %125 }
  0x99   :  { %1442 = vperm.xlu0 %1857, %v1332_v30   ;;  %1447 = vperm.xlu1 %1858, %v1333_v31  }
  0x9c   :  { %v2378_v3 = vpop.permute.xlu0 %210  ;;  %v2380_v4 = vpop.permute.xlu1 %215 }
  0x9d   :  { %853 = vperm.xlu0 %1857, %v727_v32   ;;  %1452 = vperm.xlu1 %1858, %v1334_v33  }
  0xa0   :  { %v131_v5 = vpop.permute.xlu0 %130  ;;  %v136_v6 = vpop.permute.xlu1 %135 }
  0xa1   :  { %858 = vperm.xlu0 %1857, %v728_v34   ;;  %1457 = vperm.xlu1 %1858, %v1335_v35  }
  0xa4   :  { %v2382_v7 = vpop.permute.xlu0 %220  ;;  %v2384_v8 = vpop.permute.xlu1 %225 }
  0xa5   :  { %863 = vperm.xlu0 %1857, %v729_v38   ;;  %1462 = vperm.xlu1 %1858, %v1336_v39  }
  0xa8   :  { %v141_v9 = vpop.permute.xlu0 %140  ;;  %v2386_v10 = vpop.permute.xlu1 %145 }
  0xa9   :  { %868 = vperm.xlu0 %1857, %v730_v41   ;;  %1467 = vperm.xlu1 %1858, %v1337_v42  }
  0xac   :  { %v2388_v11 = vpop.permute.xlu0 %230  ;;  %v2390_v12 = vpop.permute.xlu1 %235 }
  0xad   :  { %873 = vperm.xlu0 %1857, %v731_v44   ;;  %1472 = vperm.xlu1 %1858, %v1338_v45  }
  0xb0   :  { %v151_v13 = vpop.permute.xlu0 %150  ;;  %v156_v17 = vpop.permute.xlu1 %155 }
  0xb1   :  { %878 = vperm.xlu0 %1857, %v732_v50   ;;  %1477 = vperm.xlu1 %1858, %v1339_v51  }
  0xb4   :  { %v2394_v26 = vpop.permute.xlu0 %240  ;;  %v2396_v30 = vpop.permute.xlu1 %245 }
  0xb5   :  { %883 = vperm.xlu0 %1857, %v733_v53   ;;  %1482 = vperm.xlu1 %1858, %v1340_v54  }
  0xb8   :  { %v161_v44 = vpop.permute.xlu0 %160  ;;  %v166_v51 = vpop.permute.xlu1 %165 }
  0xb9   :  { %888 = vperm.xlu0 %1857, %v734_v56   ;;  %1487 = vperm.xlu1 %1858, %v1341_v57  }
  0xbd   :  { %893 = vperm.xlu0 %1857, %v735_v60   ;;  %1492 = vperm.xlu1 %1858, %v1342_v61  }
  0xc1   :  { %1497 = vperm.xlu0 %1857, %v1343_v63   ;;  %1502 = vperm.xlu1 %1858, %v1344_v0   ;;  %v2404_v63 = vpop.permute.xlu0 %250 }
  0xc5   :  { %1577 = vperm.xlu0 %1857, %v1574_v2  }
  0xe1   :  { %v1809_v14 = vpop.f32.mrb[0].mxu0 }
  0xe2   :  { %v442_v15 = vadd.f32 %v1809_v14, %v111_v52  ;;  %v433_v16 = vpop.f32.mrb[1].mxu0  ;;  %v2408_v14 = vpop.permute.xlu1 %255 }
  0xe3   :  { %v434_v18 = vadd.f32 %v433_v16, %v2310_v37  ;;  %v1810_v19 = vpop.f32.mrb[2].mxu0 }
  0xe4   :  { %v594_v20 = vmul.f32 0.2, %v442_v15  ;;  %v445_v21 = vadd.f32 %v1810_v19, %v116_v55  ;;  %vm562_vm1 = vcmp.gt.f32.partialorder %v442_v15, 0.0  ;;  %v436_v22 = vpop.f32.mrb[3].mxu0 }
  0xe5   :  { %v592_v23 = vmul.f32 0.2, %v434_v18  ;;  %v437_v25 = vadd.f32 %v436_v22, %v2326_v43  ;;  %vm560_vm3 = vcmp.gt.f32.partialorder %v434_v18, 0.0  ;;  %v171_v22 = vpop.permute.xlu0 %170 }
  0xe6   :  { %vm563_vm2 = vcmp.gt.f32.partialorder %v445_v21, 0.0  ;;  %v595_v24 = vmul.f32 0.2, %v445_v21  ;;  %v626_v27 = vsel %vm562_vm1, %v442_v15, %v594_v20 }
  0xe7   :  { %vm561_vm4 = vcmp.gt.f32.partialorder %v437_v25, 0.0  ;;  %v593_v29 = vmul.f32 0.2, %v437_v25  ;;  %v624_v33 = vsel %vm560_vm3, %v434_v18, %v592_v23 }
  0xe8   :  { %v627_v28 = vsel %vm563_vm2, %v445_v21, %v595_v24 }
  0xe9   :  { %v2398_v31 = vpack.c.bf16 %v627_v28, %v626_v27  ;;  %v1813_v32 = vpop.f32.mrb[4].mxu0  ;;  %v625_v34 = vsel %vm561_vm4, %v437_v25, %v593_v29  ;;  %v176_v28 = vpop.permute.xlu1 %175 }
  0xea   :  { %v458_v35 = vadd.f32 %v1813_v32, %v131_v5  ;;  %v449_v37 = vpop.f32.mrb[5].mxu0  ;;  %v2400_v38 = vpack.c.bf16 %v625_v34, %v624_v33 }
  0xeb   :  { %v450_v39 = vadd.f32 %v449_v37, %v121_v62  ;;  %v1814_v41 = vpop.f32.mrb[6].mxu0 }
  0xec   :  { %v598_v42 = vmul.f32 0.2, %v458_v35  ;;  %v461_v43 = vadd.f32 %v1814_v41, %v136_v6  ;;  %vm566_vm5 = vcmp.gt.f32.partialorder %v458_v35, 0.0  ;;  %v452_v45 = vpop.f32.mrb[7].mxu0 }
  0xed   :  { %v596_v46 = vmul.f32 0.2, %v450_v39  ;;  %v453_v50 = vadd.f32 %v452_v45, %v126_v1  ;;  %vm564_vm7 = vcmp.gt.f32.partialorder %v450_v39, 0.0 }
  0xee   :  { %vm567_vm6 = vcmp.gt.f32.partialorder %v461_v43, 0.0  ;;  %v599_v48 = vmul.f32 0.2, %v461_v43  ;;  %v630_v52 = vsel %vm566_vm5, %v458_v35, %v598_v42 }
  0xef   :  { %vm565_vm8 = vcmp.gt.f32.partialorder %v453_v50, 0.0  ;;  %v597_v54 = vmul.f32 0.2, %v453_v50  ;;  %v628_v57 = vsel %vm564_vm7, %v450_v39, %v596_v46 }
  0xf0   :  { %v631_v53 = vsel %vm567_vm6, %v461_v43, %v599_v48 }
  0xf1   :  { %v2402_v55 = vpack.c.bf16 %v631_v53, %v630_v52  ;;  %v1817_v56 = vpop.f32.mrb[8].mxu0  ;;  %v629_v60 = vsel %vm565_vm8, %v453_v50, %v597_v54 }
  0xf2   :  { %v474_v61 = vadd.f32 %v1817_v56, %v151_v13  ;;  %v465_v62 = vpop.f32.mrb[9].mxu0  ;;  %v2406_v0 = vpack.c.bf16 %v629_v60, %v628_v57 }
  0xf3   :  { %v466_v2 = vadd.f32 %v465_v62, %v141_v9  ;;  %v1818_v5 = vpop.f32.mrb[10].mxu0 }
  0xf4   :  { %v602_v1 = vmul.f32 0.2, %v474_v61  ;;  %v477_v6 = vadd.f32 %v1818_v5, %v156_v17  ;;  %vm570_vm9 = vcmp.gt.f32.partialorder %v474_v61, 0.0  ;;  %v468_v15 = vpop.f32.mrb[11].mxu0 }
  0xf5   :  { %v600_v16 = vmul.f32 0.2, %v466_v2  ;;  %v469_v19 = vadd.f32 %v468_v15, %v2386_v10  ;;  %vm568_vm11 = vcmp.gt.f32.partialorder %v466_v2, 0.0 }
  0xf6   :  { %vm571_vm10 = vcmp.gt.f32.partialorder %v477_v6, 0.0  ;;  %v603_v18 = vmul.f32 0.2, %v477_v6  ;;  %v634_v13 = vsel %vm570_vm9, %v474_v61, %v602_v1 }
  0xf7   :  { %vm569_vm12 = vcmp.gt.f32.partialorder %v469_v19, 0.0  ;;  %v601_v21 = vmul.f32 0.2, %v469_v19  ;;  %v632_v24 = vsel %vm568_vm11, %v466_v2, %v600_v16 }
  0xf8   :  { %v635_v20 = vsel %vm571_vm10, %v477_v6, %v603_v18 }
  0xf9   :  { %v2411_v23 = vpack.c.bf16 %v635_v20, %v634_v13  ;;  %v1821_v9 = vpop.f32.mrb[12].mxu0  ;;  %v633_v17 = vsel %vm569_vm12, %v469_v19, %v601_v21 }
  0xfa   :  { %v490_v25 = vadd.f32 %v1821_v9, %v171_v22  ;;  %v481_v27 = vpop.f32.mrb[13].mxu0  ;;  %v2413_v29 = vpack.c.bf16 %v633_v17, %v632_v24 }
  0xfb   :  { %v482_v32 = vadd.f32 %v481_v27, %v161_v44  ;;  %v1822_v33 = vpop.f32.mrb[14].mxu0 }
  0xfc   :  { %v606_v34 = vmul.f32 0.2, %v490_v25  ;;  %v493_v10 = vadd.f32 %v1822_v33, %v176_v28  ;;  %vm574_vm13 = vcmp.gt.f32.partialorder %v490_v25, 0.0  ;;  %v484_v35 = vpop.f32.mrb[15].mxu0 }
  0xfd   :  { %v604_v37 = vmul.f32 0.2, %v482_v32  ;;  %v485_v41 = vadd.f32 %v484_v35, %v166_v51  ;;  %vm572_vm15 = vcmp.gt.f32.partialorder %v482_v32, 0.0 }
  0xfe   :  { %vm575_vm14 = vcmp.gt.f32.partialorder %v493_v10, 0.0  ;;  %v607_v39 = vmul.f32 0.2, %v493_v10  ;;  %v638_v42 = vsel %vm574_vm13, %v490_v25, %v606_v34 }
  0xff   :  { %vm573_vm0 = vcmp.gt.f32.partialorder %v485_v41, 0.0  ;;  %v605_v45 = vmul.f32 0.2, %v485_v41  ;;  %v636_v50 = vsel %vm572_vm15, %v482_v32, %v604_v37 }
 0x100   :  { %v639_v43 = vsel %vm575_vm14, %v493_v10, %v607_v39 }
 0x101   :  { %v2415_v46 = vpack.c.bf16 %v639_v43, %v638_v42  ;;  %v1825_v48 = vpop.f32.mrb[16].mxu0  ;;  %v637_v52 = vsel %vm573_vm0, %v485_v41, %v605_v45 }
 0x102   :  { %v506_v44 = vadd.f32 %v1825_v48, %v2337_v47  ;;  %v497_v53 = vpop.f32.mrb[17].mxu0  ;;  %v2418_v54 = vpack.c.bf16 %v637_v52, %v636_v50 }
 0x103   :  { %v498_v56 = vadd.f32 %v497_v53, %v2308_v36  ;;  %v1826_v57 = vpop.f32.mrb[18].mxu0 }
 0x104   :  { %v610_v60 = vmul.f32 0.2, %v506_v44  ;;  %v509_v51 = vadd.f32 %v1826_v57, %v2342_v49  ;;  %vm578_vm1 = vcmp.gt.f32.partialorder %v506_v44, 0.0  ;;  %v500_v61 = vpop.f32.mrb[19].mxu0 }
 0x105   :  { %v608_v62 = vmul.f32 0.2, %v498_v56  ;;  %v501_v5 = vadd.f32 %v500_v61, %v2318_v40  ;;  %vm576_vm3 = vcmp.gt.f32.partialorder %v498_v56, 0.0 }
 0x106   :  { %vm579_vm2 = vcmp.gt.f32.partialorder %v509_v51, 0.0  ;;  %v611_v2 = vmul.f32 0.2, %v509_v51  ;;  %v642_v47 = vsel %vm578_vm1, %v506_v44, %v610_v60 }
 0x107   :  { %vm577_vm4 = vcmp.gt.f32.partialorder %v501_v5, 0.0  ;;  %v609_v1 = vmul.f32 0.2, %v501_v5  ;;  %v640_v19 = vsel %vm576_vm3, %v498_v56, %v608_v62 }
 0x108   :  { %v643_v6 = vsel %vm579_vm2, %v509_v51, %v611_v2 }
 0x109   :  { %v1829_v15 = vpop.f32.mrb[20].mxu0  ;;  %v697_v16 = vpack.c.bf16 %v643_v6, %v642_v47  ;;  %v641_v13 = vsel %vm577_vm4, %v501_v5, %v609_v1  ;;  %v1887_v6 = vld [vmem:[%s2728_s3 + $0x10] ss:$8 sps:$4 sm:$0xff]  }
 0x10a   :  { %v522_v36 = vadd.f32 %v1829_v15, %v2378_v3  ;;  %v513_v18 = vpop.f32.mrb[21].mxu0  ;;  %v696_v21 = vpack.c.bf16 %v641_v13, %v640_v19  ;;  %v1889_v15 = vld [vmem:[%s2728_s3 + $0x24] ss:$8 sps:$4 sm:$0xff]   ;;  %v1895_v19 = vld [vmem:[%s2728_s3 + $0x34] ss:$8 sps:$4 sm:$0xff]  }
 0x10b   :  { %v514_v49 = vadd.f32 %v513_v18, %v2362_v58  ;;  %v1830_v20 = vpop.f32.mrb[22].mxu0  ;;  %v1894_v18 = vld [vmem:[%s2728_s3 + $0x70] ss:$8 sps:$4 sm:$0xff]   ;;  %v1897_v13 = vld [vmem:[%s2728_s3 + $0x84] ss:$8 sps:$4 sm:$0xff]  }
 0x10c   :  { %v614_v22 = vmul.f32 0.2, %v522_v36  ;;  %v525_v9 = vadd.f32 %v1830_v20, %v2380_v4  ;;  %vm582_vm5 = vcmp.gt.f32.partialorder %v522_v36, 0.0  ;;  %v516_v40 = vpop.f32.mrb[23].mxu0  ;;  %1691 = vmatprep.subr.bf16.mxu0 %v696_v21  ;;  %1839 = vmatprep.subr.bf16.mxu1 %v696_v21  ;;  %v1900_v20 = vld [vmem:[%s2728_s3 + $0x80] ss:$8 sps:$4 sm:$0xff]  }
 0x10d   :  { %v612_v24 = vmul.f32 0.2, %v514_v49  ;;  %v517_v25 = vadd.f32 %v516_v40, %v2364_v59  ;;  %1692 = vmatpush3.bf16.msra.mxu0 %v2400_v38  ;;  %1847 = vmatpush3.bf16.msra.mxu1 %v2400_v38  ;;  %vm580_vm7 = vcmp.gt.f32.partialorder %v514_v49, 0.0  ;;  %v1901_v21 = vld [vmem:[%s2728_s3 + $0x44] ss:$8 sps:$4 sm:$0xff]  }
 0x10e   :  { %vm583_vm6 = vcmp.gt.f32.partialorder %v525_v9, 0.0  ;;  %v615_v17 = vmul.f32 0.2, %v525_v9  ;;  %1693 = vmatprep.subr.bf16.mxu0 %v697_v16  ;;  %1840 = vmatprep.subr.bf16.mxu1 %v697_v16  ;;  %v646_v3 = vsel %vm582_vm5, %v522_v36, %v614_v22  ;;  %v1891_v16 = vld [vmem:[%s2728_s3 + $0x74] ss:$8 sps:$4 sm:$0xff]  }
 0x10f   :  { %vm581_vm8 = vcmp.gt.f32.partialorder %v517_v25, 0.0  ;;  %v613_v58 = vmul.f32 0.2, %v517_v25  ;;  %v644_v33 = vsel %vm580_vm7, %v514_v49, %v612_v24  ;;  %v1893_v36 = vld [vmem:[%s2728_s3 + $0x20] ss:$8 sps:$4 sm:$0xff]  }
 0x110   :  { %v647_v4 = vsel %vm583_vm6, %v525_v9, %v615_v17  ;;  %v1899_v49 = vld [vmem:[%s2728_s3 + $0x30] ss:$8 sps:$4 sm:$0xff]   ;;  %v1903_v22 = vld [vmem:[%s2728_s3 + $0x94] ss:$8 sps:$4 sm:$0xff]   ;;  %v1905_v9 = vld [vmem:[%s2728_s3 + $0x40] ss:$8 sps:$4 sm:$0xff]  }
 0x111   :  { %v1833_v27 = vpop.f32.mrb[24].mxu0  ;;  %v699_v28 = vpack.c.bf16 %v647_v4, %v646_v3  ;;  %1694 = vmatpush3.bf16.msra.mxu0 %v2398_v31  ;;  %1848 = vmatpush3.bf16.msra.mxu1 %v2398_v31  ;;  %v645_v34 = vsel %vm581_vm8, %v517_v25, %v613_v58  ;;  %v1906_v40 = vld [vmem:[%s2728_s3 + $0x90] ss:$8 sps:$4 sm:$0xff]   ;;  %v1907_v24 = vld [vmem:[%s2728_s3 + $0xa4] ss:$8 sps:$4 sm:$0xff]  }
 0x112   :  { %v538_v32 = vadd.f32 %v1833_v27, %v2388_v11  ;;  %v529_v59 = vpop.f32.mrb[25].mxu0  ;;  %v698_v35 = vpack.c.bf16 %v645_v34, %v644_v33  ;;  %v1909_v17 = vld [vmem:[%s2728_s3 + $0xa0] ss:$8 sps:$4 sm:$0xff]   ;;  %v1910_v25 = vld [vmem:[%s2728_s3 + $0xb4] ss:$8 sps:$4 sm:$0xff]  }
 0x113   :  { %v530_v38 = vadd.f32 %v529_v59, %v2382_v7  ;;  %v1834_v10 = vpop.f32.mrb[26].mxu0  ;;  %v1912_v58 = vld [vmem:[%s2728_s3 + $0xb0] ss:$8 sps:$4 sm:$0xff]   ;;  %v1913_v3 = vld [vmem:[%s2728_s3 + $0xc4] ss:$8 sps:$4 sm:$0xff]  }
 0x114   :  { %v618_v37 = vmul.f32 0.2, %v538_v32  ;;  %v541_v39 = vadd.f32 %v1834_v10, %v2390_v12  ;;  %vm586_vm9 = vcmp.gt.f32.partialorder %v538_v32, 0.0  ;;  %v532_v41 = vpop.f32.mrb[27].mxu0  ;;  %1695 = vmatprep.subr.bf16.mxu0 %v698_v35  ;;  %1841 = vmatprep.subr.bf16.mxu1 %v698_v35  ;;  %v1915_v4 = vld [vmem:[%s2728_s3 + $0xc0] ss:$8 sps:$4 sm:$0xff]   ;;  %v744_v10 = vpop.permute.xlu1 %743 }
 0x115   :  { %v616_v42 = vmul.f32 0.2, %v530_v38  ;;  %v533_v43 = vadd.f32 %v532_v41, %v2384_v8  ;;  %1696 = vmatpush3.bf16.msra.mxu0 %v2406_v0  ;;  %1849 = vmatpush3.bf16.msra.mxu1 %v2406_v0  ;;  %vm584_vm11 = vcmp.gt.f32.partialorder %v530_v38, 0.0  ;;  %v1916_v27 = vld [vmem:[%s2728_s3 + $0xd4] ss:$8 sps:$4 sm:$0xff]  }
 0x116   :  { %vm587_vm10 = vcmp.gt.f32.partialorder %v541_v39, 0.0  ;;  %v619_v11 = vmul.f32 0.2, %v541_v39  ;;  %1697 = vmatprep.subr.bf16.mxu0 %v699_v28  ;;  %1842 = vmatprep.subr.bf16.mxu1 %v699_v28  ;;  %v650_v31 = vsel %vm586_vm9, %v538_v32, %v618_v37  ;;  %v1918_v28 = vld [vmem:[%s2728_s3 + $0xd0] ss:$8 sps:$4 sm:$0xff]  }
 0x117   :  { %vm585_vm12 = vcmp.gt.f32.partialorder %v533_v43, 0.0  ;;  %v617_v7 = vmul.f32 0.2, %v533_v43  ;;  %v648_v52 = vsel %vm584_vm11, %v530_v38, %v616_v42  ;;  %v1919_v32 = vld [vmem:[%s2728_s3 + $0xe4] ss:$8 sps:$4 sm:$0xff]   ;;  %v739_v38 = vpop.permute.xlu0 %738 }
 0x118   :  { %v651_v12 = vsel %vm587_vm10, %v541_v39, %v619_v11  ;;  %v1921_v59 = vld [vmem:[%s2728_s3 + $0xe0] ss:$8 sps:$4 sm:$0xff]   ;;  %v1922_v33 = vld [vmem:[%s2728_s3 + $0xf4] ss:$8 sps:$4 sm:$0xff]   ;;  %v1924_v34 = vld [vmem:[%s2728_s3 + $0xf0] ss:$8 sps:$4 sm:$0xff]   ;;  %v2543_v37 = vpop.permute.xlu1 %753 }
 0x119   :  { %v1837_v45 = vpop.f32.mrb[28].mxu0  ;;  %v701_v48 = vpack.c.bf16 %v651_v12, %v650_v31  ;;  %1698 = vmatpush3.bf16.msra.mxu0 %v2402_v55  ;;  %1850 = vmatpush3.bf16.msra.mxu1 %v2402_v55  ;;  %v649_v44 = vsel %vm585_vm12, %v533_v43, %v617_v7 }
 0x11a   :  { %v554_v50 = vadd.f32 %v1837_v45, %v2404_v63  ;;  %v545_v8 = vpop.f32.mrb[29].mxu0  ;;  %v700_v56 = vpack.c.bf16 %v649_v44, %v648_v52 }
 0x11b   :  { %v546_v0 = vadd.f32 %v545_v8, %v2394_v26  ;;  %v1838_v53 = vpop.f32.mrb[30].mxu0  ;;  %v2541_v35 = vpop.permute.xlu0 %748 }
 0x11c   :  { %v622_v57 = vmul.f32 0.2, %v554_v50  ;;  %v557_v60 = vadd.f32 %v1838_v53, %v2408_v14  ;;  %vm590_vm13 = vcmp.gt.f32.partialorder %v554_v50, 0.0  ;;  %v548_v51 = vpop.f32.mrb[31].mxu0  ;;  %1699 = vmatprep.subr.bf16.mxu0 %v700_v56  ;;  %1843 = vmatprep.subr.bf16.mxu1 %v700_v56  ;;  %v2547_v41 = vpop.permute.xlu1 %763 }
 0x11d   :  { %v620_v61 = vmul.f32 0.2, %v546_v0  ;;  %v549_v62 = vadd.f32 %v548_v51, %v2396_v30  ;;  %1700 = vmatpush3.bf16.msra.mxu0 %v2413_v29  ;;  %1851 = vmatpush3.bf16.msra.mxu1 %v2413_v29  ;;  %vm588_vm15 = vcmp.gt.f32.partialorder %v546_v0, 0.0  ;;  %v1877_v30 = vld [vmem:[%s2728_s3] ss:$8 sps:$4 sm:$0xff]  }
 0x11e   :  { %vm591_vm14 = vcmp.gt.f32.partialorder %v557_v60, 0.0  ;;  %v623_v63 = vmul.f32 0.2, %v557_v60  ;;  %1701 = vmatprep.subr.bf16.mxu0 %v701_v48  ;;  %1844 = vmatprep.subr.bf16.mxu1 %v701_v48  ;;  %v654_v55 = vsel %vm590_vm13, %v554_v50, %v622_v57  ;;  %v1880_v29 = vld [vmem:[%s2728_s3 + $0x50] ss:$8 sps:$4 sm:$0xff]  }
 0x11f   :  { %vm589_vm0 = vcmp.gt.f32.partialorder %v549_v62, 0.0  ;;  %v621_v26 = vmul.f32 0.2, %v549_v62  ;;  %v652_v5 = vsel %vm588_vm15, %v546_v0, %v620_v61  ;;  %v2545_v39 = vpop.permute.xlu0 %758 }
 0x120   :  { %v655_v14 = vsel %vm591_vm14, %v557_v60, %v623_v63  ;;  %v2551_v11 = vpop.permute.xlu1 %773 }
 0x121   :  { %v703_v2 = vpack.c.bf16 %v655_v14, %v654_v55  ;;  %1702 = vmatpush3.bf16.msra.mxu0 %v2411_v23  ;;  %1852 = vmatpush3.bf16.msra.mxu1 %v2411_v23  ;;  %v653_v1 = vsel %vm589_vm0, %v549_v62, %v621_v26  ;;  %v1883_v23 = vld [vmem:[%s2728_s3 + $0x14] ss:$8 sps:$4 sm:$0xff]  }
 0x122   :  { %v702_v47 = vpack.c.bf16 %v653_v1, %v652_v5 }
 0x123   :  { %v2549_v42 = vpop.permute.xlu0 %768 }
 0x124   :  { %1703 = vmatprep.subr.bf16.mxu0 %v702_v47  ;;  %1845 = vmatprep.subr.bf16.mxu1 %v702_v47  ;;  %v2555_v7 = vpop.permute.xlu1 %783 }
 0x125   :  { %1704 = vmatpush3.bf16.msra.mxu0 %v2418_v54  ;;  %1853 = vmatpush3.bf16.msra.mxu1 %v2418_v54  ;;  %v1885_v54 = vld [vmem:[%s2728_s3 + $0x64] ss:$8 sps:$4 sm:$0xff]  }
 0x126   :  { %1705 = vmatprep.subr.bf16.mxu0 %v703_v2  ;;  %1846 = vmatprep.subr.bf16.mxu1 %v703_v2 }
 0x127   :  { %v2553_v43 = vpop.permute.xlu0 %778 }
 0x128   :  { %v2559_v12 = vpop.permute.xlu1 %793 }
 0x129   :  { %1706 = vmatpush3.bf16.msra.mxu0 %v2415_v46  ;;  %1854 = vmatpush3.bf16.msra.mxu1 %v2415_v46  ;;  %v1888_v46 = vld [vmem:[%s2728_s3 + $0x60] ss:$8 sps:$4 sm:$0xff]   ;;  %s1954_s3 = smov [#allocation3]  }
 0x12a   :  { %s1598_s23 = sshll.u32 %s1954_s3, 4  ;;  %s1599_s23 = int_to_ptr.vmem [resolvable:$true] %s1598_s23 }
 0x12b   :  { %v2557_v31 = vpop.permute.xlu0 %788  ;;  %s1929_s24 = scalar_lea.vmem %s1599_s23, 16  ;;  %s1933_s25 = scalar_lea.vmem %s1599_s23, 32 }
 0x12c   :  { %1089 = vmatmul.mubr.bf16.vlgmr.msra.gmra.mrb[32].mxu0 %v1877_v30  ;;  %1129 = vmatmul.mubr.bf16.vlgmr.msra.gmra.mrb[0].mxu1 %v1880_v29  ;;  %v2563_v48 = vpop.permute.xlu1 %803  ;;  %p1930_p0 = scmp.ne.s32.totalorder %s1599_s23, %s1929_s24  ;;  %p1934_p1 = scmp.lt.s32.totalorder %s1599_s23, %s1599_s23 }
 0x12d   :  { %1096 = vmatprep.mubr.bf16.mxu0 %v1883_v23  ;;  %1136 = vmatprep.mubr.bf16.mxu1 %v1885_v54  ;;  %p1935_p2 = scmp.lt.s32.totalorder %s1933_s25, %s1929_s24 }
 0x12f   :  { %v2561_v45 = vpop.permute.xlu0 %798  ;;  %p1936_p3 = por %p1935_p2, %p1934_p1 }
 0x130   :  { %v2567_v8 = vpop.permute.xlu1 %813 }
 0x131   :  { %p1937_p4 = pnand %p1936_p3, %p1930_p0 }
 0x133   :  { %v2565_v50 = vpop.permute.xlu0 %808 }
 0x134   :  { %1097 = vmatmul.mubr.bf16.gmra.mrb[36].mxu0 %v1887_v6  ;;  %1137 = vmatmul.mubr.bf16.gmra.mrb[4].mxu1 %v1888_v46  ;;  %v2571_v44 = vpop.permute.xlu1 %823 }
 0x135   :  { %1104 = vmatprep.mubr.bf16.mxu0 %v1889_v15  ;;  %1144 = vmatprep.mubr.bf16.mxu1 %v1891_v16 }
 0x137   :  { %v2569_v52 = vpop.permute.xlu0 %818 }
 0x138   :  { %v2575_v53 = vpop.permute.xlu1 %833 }
 0x13b   :  { %v2573_v0 = vpop.permute.xlu0 %828 }
 0x13c   :  { %1105 = vmatmul.mubr.bf16.gmra.mrb[40].mxu0 %v1893_v36  ;;  %1145 = vmatmul.mubr.bf16.gmra.mrb[8].mxu1 %v1894_v18  ;;  %v2579_v57 = vpop.permute.xlu1 %843 }
 0x13d   :  { %1112 = vmatprep.mubr.bf16.mxu0 %v1895_v19  ;;  %1152 = vmatprep.mubr.bf16.mxu1 %v1897_v13 }
 0x13f   :  { %v2577_v56 = vpop.permute.xlu0 %838 }
 0x140   :  { %v1348_v51 = vpop.permute.xlu1 %1347 }
 0x143   :  { %v2581_v60 = vpop.permute.xlu0 %848 }
 0x144   :  { %1113 = vmatmul.mubr.bf16.gmra.mrb[44].mxu0 %v1899_v49  ;;  %1153 = vmatmul.mubr.bf16.gmra.mrb[12].mxu1 %v1900_v20  ;;  %v1358_v63 = vpop.permute.xlu1 %1357 }
 0x145   :  { %1120 = vmatprep.mubr.bf16.mxu0 %v1901_v21  ;;  %1160 = vmatprep.mubr.bf16.mxu1 %v1903_v22 }
 0x147   :  { %v1353_v61 = vpop.permute.xlu0 %1352 }
 0x148   :  { %v2585_v26 = vpop.permute.xlu1 %1367 }
 0x14b   :  { %v2583_v62 = vpop.permute.xlu0 %1362 }
 0x14c   :  { %1121 = vmatmul.mubr.bf16.gmra.mrb[48].mxu0 %v1905_v9  ;;  %1161 = vmatmul.mubr.bf16.gmra.mrb[16].mxu1 %v1906_v40  ;;  %v2589_v14 = vpop.permute.xlu1 %1377 }
 0x14d   :  { %1168 = vmatprep.mubr.bf16.mxu1 %v1907_v24 }
 0x14f   :  { %v2587_v55 = vpop.permute.xlu0 %1372 }
 0x150   :  { %v2593_v5 = vpop.permute.xlu1 %1387 }
 0x153   :  { %v2591_v2 = vpop.permute.xlu0 %1382 }
 0x154   :  { %1169 = vmatmul.mubr.bf16.gmra.mrb[20].mxu1 %v1909_v17  ;;  %v2597_v47 = vpop.permute.xlu1 %1397 }
 0x155   :  { %1176 = vmatprep.mubr.bf16.mxu1 %v1910_v25 }
 0x157   :  { %v2595_v1 = vpop.permute.xlu0 %1392 }
 0x158   :  { %v2601_v29 = vpop.permute.xlu1 %1407 }
 0x15b   :  { %v2599_v30 = vpop.permute.xlu0 %1402 }
 0x15c   :  { %1177 = vmatmul.mubr.bf16.gmra.mrb[24].mxu1 %v1912_v58  ;;  %v2605_v54 = vpop.permute.xlu1 %1417 }
 0x15d   :  { %1184 = vmatprep.mubr.bf16.mxu1 %v1913_v3 }
 0x15f   :  { %v2603_v23 = vpop.permute.xlu0 %1412 }
 0x160   :  { %v2613_v17 = vpop.permute.xlu1 %1427 }
 0x163   :  { %v2611_v24 = vpop.permute.xlu0 %1422 }
 0x164   :  { %1185 = vmatmul.mubr.bf16.gmra.mrb[28].mxu1 %v1915_v4 }
 0x165   :  { %1192 = vmatprep.mubr.bf16.mxu1 %v1916_v27 }
 0x16c   :  { %1193 = vmatmul.mubr.bf16.gmra.mrb[32].mxu1 %v1918_v28 }
 0x16d   :  { %1200 = vmatprep.mubr.bf16.mxu1 %v1919_v32 }
 0x174   :  { %1201 = vmatmul.mubr.bf16.gmra.mrb[36].mxu1 %v1921_v59 }
 0x175   :  { %1208 = vmatprep.mubr.bf16.mxu1 %v1922_v33 }
 0x17c   :  { %1209 = vmatmul.mubr.bf16.gmra.mrb[40].mxu1 %v1924_v34 }
 0x1ff   :  { %v1707_v6 = vpop.f32.mrb[32].mxu0  ;;  %v1737_v46 = vpop.f32.mrb[0].mxu1 }
 0x200   :  { %v1708_v15 = vpop.f32.mrb[33].mxu0  ;;  %v1738_v16 = vpop.f32.mrb[1].mxu1 }
 0x201   :  { %v1709_v36 = vadd.f32 %v1708_v15, %v1707_v6  ;;  %v2607_v18 = vadd.f32 %v1738_v16, %v1737_v46  ;;  %v1710_v19 = vpop.f32.mrb[34].mxu0  ;;  %v1740_v13 = vpop.f32.mrb[2].mxu1 }
 0x202   :  { %v1711_v49 = vpop.f32.mrb[35].mxu0  ;;  %v1741_v20 = vpop.f32.mrb[3].mxu1 }
 0x203   :  { %v1091_v21 = vadd.f32 %v1709_v36, %v739_v38  ;;  %v1712_v22 = vadd.f32 %v1711_v49, %v1710_v19  ;;  %v2609_v9 = vadd.f32 %v1741_v20, %v1740_v13 }
 0x205   :  { %vm1217_vm1 = vcmp.gt.f32.partialorder %v1091_v21, 0.0  ;;  %v1249_v40 = vmul.f32 0.2, %v1091_v21  ;;  %v1094_v25 = vadd.f32 %v1712_v22, %v744_v10  ;;  %v2622_v22 = vpop.permute.xlu1 %1437 }
 0x207   :  { %v1713_v58 = vpop.f32.mrb[36].mxu0  ;;  %v1743_v3 = vpop.f32.mrb[4].mxu1  ;;  %v1281_v4 = vsel %vm1217_vm1, %v1091_v21, %v1249_v40  ;;  %vm1218_vm2 = vcmp.gt.f32.partialorder %v1094_v25, 0.0  ;;  %v1250_v27 = vmul.f32 0.2, %v1094_v25 }
 0x208   :  { %v1714_v28 = vpop.f32.mrb[37].mxu0  ;;  %v1744_v32 = vpop.f32.mrb[5].mxu1  ;;  %v1505_v16 = vmul.f32 %v1348_v51, %v1281_v4 }
 0x209   :  { %v1715_v59 = vadd.f32 %v1714_v28, %v1713_v58  ;;  %v2615_v33 = vadd.f32 %v1744_v32, %v1743_v3  ;;  %v1716_v34 = vpop.f32.mrb[38].mxu0  ;;  %v1746_v38 = vpop.f32.mrb[6].mxu1  ;;  %v1282_v6 = vsel %vm1218_vm2, %v1094_v25, %v1250_v27 }
 0x20a   :  { %v1717_v46 = vpop.f32.mrb[39].mxu0  ;;  %v1747_v15 = vpop.f32.mrb[7].mxu1  ;;  %v1506_v36 = vmul.f32 %v1353_v61, %v1282_v6 }
 0x20b   :  { %v1099_v19 = vadd.f32 %v1715_v59, %v2541_v35  ;;  %v1718_v10 = vadd.f32 %v1717_v46, %v1716_v34  ;;  %v2618_v13 = vadd.f32 %v1747_v15, %v1746_v38  ;;  %v2620_v21 = vpop.permute.xlu0 %1432 }
 0x20c   :  { %v1537_v49 = vadd.f32 %v1506_v36, %v1505_v16 }
 0x20d   :  { %vm1219_vm3 = vcmp.gt.f32.partialorder %v1099_v19, 0.0  ;;  %v1251_v20 = vmul.f32 0.2, %v1099_v19  ;;  %v1102_v40 = vadd.f32 %v1718_v10, %v2543_v37 }
 0x20f   :  { %v1283_v58 = vsel %vm1219_vm3, %v1099_v19, %v1251_v20  ;;  %v1719_v25 = vpop.f32.mrb[40].mxu0  ;;  %v1749_v3 = vpop.f32.mrb[8].mxu1  ;;  %vm1220_vm4 = vcmp.gt.f32.partialorder %v1102_v40, 0.0  ;;  %v1252_v51 = vmul.f32 0.2, %v1102_v40 }
 0x210   :  { %v1507_v27 = vmul.f32 %v1358_v63, %v1283_v58  ;;  %v1720_v61 = vpop.f32.mrb[41].mxu0  ;;  %v1750_v35 = vpop.f32.mrb[9].mxu1 }
 0x211   :  { %v1721_v4 = vadd.f32 %v1720_v61, %v1719_v25  ;;  %v1722_v28 = vpop.f32.mrb[42].mxu0  ;;  %v1752_v32 = vpop.f32.mrb[10].mxu1  ;;  %v1284_v34 = vsel %vm1220_vm4, %v1102_v40, %v1252_v51  ;;  %v2625_v38 = vadd.f32 %v1750_v35, %v1749_v3 }
 0x212   :  { %v1538_v59 = vadd.f32 %v1537_v49, %v1507_v27  ;;  %v1723_v6 = vpop.f32.mrb[43].mxu0  ;;  %v1753_v46 = vpop.f32.mrb[11].mxu1  ;;  %v1508_v15 = vmul.f32 %v2583_v62, %v1284_v34 }
 0x213   :  { %v1107_v37 = vadd.f32 %v1721_v4, %v2545_v39  ;;  %v1724_v16 = vadd.f32 %v1723_v6, %v1722_v28  ;;  %v2629_v36 = vadd.f32 %v1753_v46, %v1752_v32  ;;  %v2632_v20 = vpop.permute.xlu0 %1442  ;;  %v2634_v49 = vpop.permute.xlu1 %1447 }
 0x214   :  { %v1539_v63 = vadd.f32 %v1538_v59, %v1508_v15 }
 0x215   :  { %vm1221_vm5 = vcmp.gt.f32.partialorder %v1107_v37, 0.0  ;;  %v1253_v19 = vmul.f32 0.2, %v1107_v37  ;;  %v1110_v10 = vadd.f32 %v1724_v16, %v2547_v41 }
 0x217   :  { %v1285_v40 = vsel %vm1221_vm5, %v1107_v37, %v1253_v19  ;;  %vm1222_vm6 = vcmp.gt.f32.partialorder %v1110_v10, 0.0  ;;  %v1254_v58 = vmul.f32 0.2, %v1110_v10  ;;  %v1725_v25 = vpop.f32.mrb[44].mxu0  ;;  %v1755_v3 = vpop.f32.mrb[12].mxu1 }
 0x218   :  { %v1509_v62 = vmul.f32 %v2585_v26, %v1285_v40  ;;  %v1726_v39 = vpop.f32.mrb[45].mxu0  ;;  %v1756_v27 = vpop.f32.mrb[13].mxu1 }
 0x219   :  { %v1286_v51 = vsel %vm1222_vm6, %v1110_v10, %v1254_v58  ;;  %v1727_v61 = vadd.f32 %v1726_v39, %v1725_v25  ;;  %v2637_v35 = vadd.f32 %v1756_v27, %v1755_v3  ;;  %v1728_v4 = vpop.f32.mrb[46].mxu0  ;;  %v1758_v28 = vpop.f32.mrb[14].mxu1  ;;  %v1131_v10 = vadd.f32 %v2607_v18, %v2557_v31 }
 0x21a   :  { %v1540_v41 = vadd.f32 %v1539_v63, %v1509_v62  ;;  %v1510_v32 = vmul.f32 %v2587_v55, %v1286_v51  ;;  %v1729_v59 = vpop.f32.mrb[47].mxu0  ;;  %v1759_v34 = vpop.f32.mrb[15].mxu1  ;;  %v1134_v31 = vadd.f32 %v2609_v9, %v2559_v12 }
 0x21b   :  { %v1115_v6 = vadd.f32 %v1727_v61, %v2549_v42  ;;  %v1730_v46 = vadd.f32 %v1729_v59, %v1728_v4  ;;  %v2641_v37 = vadd.f32 %v1759_v34, %v1758_v28  ;;  %v2643_v16 = vpop.permute.xlu0 %853  ;;  %v2645_v19 = vpop.permute.xlu1 %1452  ;;  %v1259_v4 = vmul.f32 0.2, %v1131_v10 }
 0x21c   :  { %v1541_v15 = vadd.f32 %v1540_v41, %v1510_v32  ;;  %vm1227_vm9 = vcmp.gt.f32.partialorder %v1131_v10, 0.0  ;;  %vm1228_vm11 = vcmp.gt.f32.partialorder %v1134_v31, 0.0 }
 0x21d   :  { %vm1223_vm7 = vcmp.gt.f32.partialorder %v1115_v6, 0.0  ;;  %v1255_v26 = vmul.f32 0.2, %v1115_v6  ;;  %v1118_v63 = vadd.f32 %v1730_v46, %v2551_v11  ;;  %v1291_v12 = vsel %vm1227_vm9, %v1131_v10, %v1259_v4 }
 0x21f   :  { %v1287_v55 = vsel %vm1223_vm7, %v1115_v6, %v1255_v26  ;;  %v1731_v40 = vpop.f32.mrb[48].mxu0  ;;  %v1761_v58 = vpop.f32.mrb[16].mxu1  ;;  %vm1224_vm8 = vcmp.gt.f32.partialorder %v1118_v63, 0.0  ;;  %v1256_v25 = vmul.f32 0.2, %v1118_v63 }
 0x220   :  { %v1511_v42 = vmul.f32 %v2589_v14, %v1287_v55  ;;  %v1732_v3 = vpop.f32.mrb[49].mxu0  ;;  %v1762_v62 = vpop.f32.mrb[17].mxu1  ;;  %v1139_v14 = vadd.f32 %v2615_v33, %v2561_v45  ;;  %v1142_v45 = vadd.f32 %v2618_v13, %v2563_v48  ;;  %v1147_v33 = vadd.f32 %v2625_v38, %v2565_v50 }
 0x221   :  { %v1733_v39 = vadd.f32 %v1732_v3, %v1731_v40  ;;  %v2651_v27 = vadd.f32 %v1762_v62, %v1761_v58  ;;  %v1734_v51 = vpop.f32.mrb[50].mxu0  ;;  %v1764_v61 = vpop.f32.mrb[18].mxu1  ;;  %v1288_v11 = vsel %vm1224_vm8, %v1118_v63, %v1256_v25  ;;  %v1260_v63 = vmul.f32 0.2, %v1134_v31 }
 0x222   :  { %v1542_v18 = vadd.f32 %v1541_v15, %v1511_v42  ;;  %v1735_v28 = vpop.f32.mrb[51].mxu0  ;;  %v1765_v41 = vpop.f32.mrb[19].mxu1  ;;  %v1512_v32 = vmul.f32 %v2591_v2, %v1288_v11  ;;  %v1261_v40 = vmul.f32 0.2, %v1139_v14  ;;  %vm1229_vm13 = vcmp.gt.f32.partialorder %v1139_v14, 0.0 }
 0x223   :  { %v1123_v59 = vadd.f32 %v1733_v39, %v2553_v43  ;;  %v1736_v34 = vadd.f32 %v1735_v28, %v1734_v51  ;;  %v1766_v6 = vadd.f32 %v1765_v41, %v1764_v61  ;;  %v2659_v55 = vpop.permute.xlu0 %858  ;;  %v2662_v15 = vpop.permute.xlu1 %1457  ;;  %v1515_v48 = vmul.f32 %v2597_v47, %v1291_v12 }
 0x224   :  { %v1543_v46 = vadd.f32 %v1542_v18, %v1512_v32  ;;  %v1292_v13 = vsel %vm1228_vm11, %v1134_v31, %v1260_v63  ;;  %v1293_v61 = vsel %vm1229_vm13, %v1139_v14, %v1261_v40  ;;  %vm1230_vm14 = vcmp.gt.f32.partialorder %v1142_v45, 0.0 }
 0x225   :  { %vm1225_vm10 = vcmp.gt.f32.partialorder %v1123_v59, 0.0  ;;  %v1257_v26 = vmul.f32 0.2, %v1123_v59  ;;  %v1126_v9 = vadd.f32 %v1736_v34, %v2555_v7  ;;  %v1150_v7 = vadd.f32 %v2629_v36, %v2567_v8 }
 0x226   :  { %v1262_v4 = vmul.f32 0.2, %v1142_v45  ;;  %v1263_v18 = vmul.f32 0.2, %v1147_v33  ;;  %vm1231_vm15 = vcmp.gt.f32.partialorder %v1147_v33, 0.0  ;;  %v1155_v36 = vadd.f32 %v2637_v35, %v2569_v52 }
 0x227   :  { %v1289_v2 = vsel %vm1225_vm10, %v1123_v59, %v1257_v26  ;;  %v1767_v43 = vpop.f32.mrb[20].mxu1  ;;  %vm1226_vm12 = vcmp.gt.f32.partialorder %v1126_v9, 0.0  ;;  %v1258_v42 = vmul.f32 0.2, %v1126_v9  ;;  %v2676_v11 = vpop.permute.xlu1 %1462  ;;  %v1264_v8 = vmul.f32 0.2, %v1150_v7 }
 0x228   :  { %v1513_v58 = vmul.f32 %v2593_v5, %v1289_v2  ;;  %v1768_v10 = vpop.f32.mrb[21].mxu1  ;;  %v2674_v5 = vpop.permute.xlu0 %863  ;;  %vm1232_vm0 = vcmp.gt.f32.partialorder %v1150_v7, 0.0  ;;  %v1158_v47 = vadd.f32 %v2641_v37, %v2571_v44  ;;  %v1517_v14 = vmul.f32 %v2601_v29, %v1293_v61 }
 0x229   :  { %v1769_v25 = vadd.f32 %v1768_v10, %v1767_v43  ;;  %v1770_v3 = vpop.f32.mrb[22].mxu1  ;;  %v1290_v39 = vsel %vm1226_vm12, %v1126_v9, %v1258_v42  ;;  %v1294_v32 = vsel %vm1230_vm14, %v1142_v45, %v1262_v4  ;;  %v1295_v59 = vsel %vm1231_vm15, %v1147_v33, %v1263_v18 }
 0x22a   :  { %v1544_v62 = vadd.f32 %v1543_v46, %v1513_v58  ;;  %v1771_v51 = vpop.f32.mrb[23].mxu1  ;;  %v1514_v50 = vmul.f32 %v2595_v1, %v1290_v39  ;;  %v1516_v1 = vmul.f32 %v2599_v30, %v1292_v13  ;;  %v1296_v46 = vsel %vm1232_vm0, %v1150_v7, %v1264_v8 }
 0x22b   :  { %v1772_v38 = vadd.f32 %v1771_v51, %v1770_v3  ;;  %v1265_v26 = vmul.f32 0.2, %v1155_v36  ;;  %vm1233_vm1 = vcmp.gt.f32.partialorder %v1155_v36, 0.0  ;;  %v1266_v35 = vmul.f32 0.2, %v1158_v47  ;;  %v2689_v40 = vpop.permute.xlu1 %1467 }
 0x22c   :  { %v1545_v28 = vadd.f32 %v1544_v62, %v1514_v50  ;;  %v2684_v52 = vpop.permute.xlu0 %868  ;;  %v1163_v44 = vadd.f32 %v2651_v27, %v2573_v0  ;;  %v1166_v30 = vadd.f32 %v1766_v6, %v2575_v53  ;;  %v1518_v29 = vmul.f32 %v2603_v23, %v1294_v32 }
 0x22d   :  { %vm1234_vm2 = vcmp.gt.f32.partialorder %v1158_v47, 0.0  ;;  %v1519_v43 = vmul.f32 %v2605_v54, %v1295_v59  ;;  %v1520_v33 = vmul.f32 %v2611_v24, %v1296_v46  ;;  %v1297_v58 = vsel %vm1233_vm1, %v1155_v36, %v1265_v26 }
 0x22e   :  { %v1546_v31 = vadd.f32 %v1545_v28, %v1515_v48  ;;  %v1298_v10 = vsel %vm1234_vm2, %v1158_v47, %v1266_v35  ;;  %v1267_v7 = vmul.f32 0.2, %v1163_v44  ;;  %v1268_v3 = vmul.f32 0.2, %v1166_v30 }
 0x22f   :  { %v1773_v41 = vpop.f32.mrb[24].mxu1  ;;  %v1171_v0 = vadd.f32 %v1769_v25, %v2577_v56  ;;  %vm1235_vm3 = vcmp.gt.f32.partialorder %v1163_v44, 0.0  ;;  %vm1236_vm4 = vcmp.gt.f32.partialorder %v1166_v30, 0.0  ;;  %v1174_v27 = vadd.f32 %v1772_v38, %v2579_v57  ;;  %v2696_v39 = vpop.permute.xlu1 %1472 }
 0x230   :  { %v1774_v34 = vpop.f32.mrb[25].mxu1  ;;  %v1547_v12 = vadd.f32 %v1546_v31, %v1516_v1  ;;  %v874_v6 = vpop.permute.xlu0 %873  ;;  %v1521_v54 = vmul.f32 %v2613_v17, %v1297_v58  ;;  %v1522_v24 = vmul.f32 %v2620_v21, %v1298_v10  ;;  %v1299_v50 = vsel %vm1235_vm3, %v1163_v44, %v1267_v7 }
 0x231   :  { %v1775_v9 = vadd.f32 %v1774_v34, %v1773_v41  ;;  %v1776_v63 = vpop.f32.mrb[26].mxu1  ;;  %v1300_v61 = vsel %vm1236_vm4, %v1166_v30, %v1268_v3  ;;  %v1269_v56 = vmul.f32 0.2, %v1171_v0  ;;  %vm1237_vm5 = vcmp.gt.f32.partialorder %v1171_v0, 0.0 }
 0x232   :  { %v1777_v37 = vpop.f32.mrb[27].mxu1  ;;  %v1548_v45 = vadd.f32 %v1547_v12, %v1517_v14  ;;  %v1270_v57 = vmul.f32 0.2, %v1174_v27  ;;  %vm1238_vm6 = vcmp.gt.f32.partialorder %v1174_v27, 0.0  ;;  %v1523_v17 = vmul.f32 %v2622_v22, %v1299_v50 }
 0x233   :  { %v1778_v2 = vadd.f32 %v1777_v37, %v1776_v63  ;;  %v1179_v25 = vadd.f32 %v1775_v9, %v2581_v60  ;;  %v1524_v28 = vmul.f32 %v2632_v20, %v1300_v61  ;;  %v1301_v47 = vsel %vm1237_vm5, %v1171_v0, %v1269_v56  ;;  %v1478_v41 = vpop.permute.xlu1 %1477 }
 0x234   :  { %v1549_v42 = vadd.f32 %v1548_v45, %v1518_v29  ;;  %v879_v21 = vpop.permute.xlu0 %878  ;;  %v1302_v14 = vsel %vm1238_vm6, %v1174_v27, %v1270_v57  ;;  %v1525_v22 = vmul.f32 %v2634_v49, %v1301_v47 }
 0x235   :  { %v1182_v8 = vadd.f32 %v1778_v2, %v2643_v16  ;;  %v1271_v1 = vmul.f32 0.2, %v1179_v25  ;;  %vm1239_vm7 = vcmp.gt.f32.partialorder %v1179_v25, 0.0  ;;  %v1526_v20 = vmul.f32 %v2645_v19, %v1302_v14 }
 0x236   :  { %v1550_v53 = vadd.f32 %v1549_v42, %v1519_v43 }
 0x237   :  { %v1779_v23 = vpop.f32.mrb[28].mxu1  ;;  %v1272_v34 = vmul.f32 0.2, %v1182_v8  ;;  %vm1240_vm8 = vcmp.gt.f32.partialorder %v1182_v8, 0.0  ;;  %v1303_v9 = vsel %vm1239_vm7, %v1179_v25, %v1271_v1  ;;  %v1483_v45 = vpop.permute.xlu1 %1482 }
 0x238   :  { %v1780_v62 = vpop.f32.mrb[29].mxu1  ;;  %v1551_v51 = vadd.f32 %v1550_v53, %v1520_v33  ;;  %v884_v37 = vpop.permute.xlu0 %883  ;;  %v1527_v49 = vmul.f32 %v2662_v15, %v1303_v9 }
 0x239   :  { %v1781_v48 = vadd.f32 %v1780_v62, %v1779_v23  ;;  %v1782_v13 = vpop.f32.mrb[30].mxu1  ;;  %v1304_v29 = vsel %vm1240_vm8, %v1182_v8, %v1272_v34 }
 0x23a   :  { %v1783_v4 = vpop.f32.mrb[31].mxu1  ;;  %v1552_v18 = vadd.f32 %v1551_v51, %v1521_v54  ;;  %v1528_v42 = vmul.f32 %v2676_v11, %v1304_v29 }
 0x23b   :  { %v1784_v38 = vadd.f32 %v1783_v4, %v1782_v13  ;;  %v1187_v31 = vadd.f32 %v1781_v48, %v2659_v55 }
 0x23c   :  { %v1553_v36 = vadd.f32 %v1552_v18, %v1522_v24  ;;  %v889_v54 = vpop.permute.xlu0 %888  ;;  %v1488_v24 = vpop.permute.xlu1 %1487 }
 0x23d   :  { %v1190_v32 = vadd.f32 %v1784_v38, %v2674_v5  ;;  %vm1241_vm9 = vcmp.gt.f32.partialorder %v1187_v31, 0.0  ;;  %v1273_v55 = vmul.f32 0.2, %v1187_v31 }
 0x23e   :  { %v1554_v60 = vadd.f32 %v1553_v36, %v1523_v17 }
 0x23f   :  { %v1785_v59 = vpop.f32.mrb[32].mxu1  ;;  %v1274_v44 = vmul.f32 0.2, %v1190_v32  ;;  %vm1242_vm10 = vcmp.gt.f32.partialorder %v1190_v32, 0.0  ;;  %v1305_v58 = vsel %vm1241_vm9, %v1187_v31, %v1273_v55 }
 0x240   :  { %v1786_v46 = vpop.f32.mrb[33].mxu1  ;;  %v1555_v16 = vadd.f32 %v1554_v60, %v1524_v28  ;;  %v1529_v53 = vmul.f32 %v2689_v40, %v1305_v58  ;;  %v894_v8 = vpop.permute.xlu0 %893 }
 0x241   :  { %v1787_v26 = vadd.f32 %v1786_v46, %v1785_v59  ;;  %v1788_v12 = vpop.f32.mrb[34].mxu1  ;;  %v1306_v10 = vsel %vm1242_vm10, %v1190_v32, %v1274_v44  ;;  %v1493_v36 = vpop.permute.xlu1 %1492 }
 0x242   :  { %v1789_v63 = vpop.f32.mrb[35].mxu1  ;;  %v1556_v35 = vadd.f32 %v1555_v16, %v1525_v22  ;;  %v1530_v15 = vmul.f32 %v2696_v39, %v1306_v10 }
 0x243   :  { %v1195_v30 = vadd.f32 %v1787_v26, %v2684_v52  ;;  %v1790_v5 = vadd.f32 %v1789_v63, %v1788_v12 }
 0x244   :  { %v1557_v2 = vadd.f32 %v1556_v35, %v1526_v20  ;;  %v1498_v16 = vpop.permute.xlu0 %1497  ;;  %v1580_v35 = vlaneseq }
 0x245   :  { %v1275_v43 = vmul.f32 0.2, %v1195_v30  ;;  %v1198_v33 = vadd.f32 %v1790_v5, %v874_v6  ;;  %vm1243_vm11 = vcmp.gt.f32.partialorder %v1195_v30, 0.0  ;;  %v1503_v20 = vpop.permute.xlu1 %1502 }
 0x246   :  { %v1558_v19 = vadd.f32 %v1557_v2, %v1527_v49  ;;  %v1581_v5 = vshrl.u32 %v1580_v35, 7 }
 0x247   :  { %v1276_v7 = vmul.f32 0.2, %v1198_v33  ;;  %v1791_v3 = vpop.f32.mrb[36].mxu1  ;;  %vm1244_vm12 = vcmp.gt.f32.partialorder %v1198_v33, 0.0  ;;  %v1307_v27 = vsel %vm1243_vm11, %v1195_v30, %v1275_v43 }
 0x248   :  { %v1792_v52 = vpop.f32.mrb[37].mxu1  ;;  %v1559_v0 = vadd.f32 %v1558_v19, %v1528_v42  ;;  %v1531_v50 = vmul.f32 %v1478_v41, %v1307_v27  ;;  %v1578_v49 = vpop.permute.xlu0 %1577 }
 0x249   :  { %v1793_v23 = vadd.f32 %v1792_v52, %v1791_v3  ;;  %v1794_v62 = vpop.f32.mrb[38].mxu1  ;;  %v1308_v48 = vsel %vm1244_vm12, %v1198_v33, %v1276_v7 }
 0x24a   :  { %v1795_v6 = vpop.f32.mrb[39].mxu1  ;;  %v1560_v51 = vadd.f32 %v1559_v0, %v1529_v53  ;;  %v1532_v4 = vmul.f32 %v1483_v45, %v1308_v48  ;;  %v1582_v45 = vsub.s32 0, %v1581_v5 }
 0x24b   :  { %v1203_v13 = vadd.f32 %v1793_v23, %v879_v21  ;;  %v1796_v11 = vadd.f32 %v1795_v6, %v1794_v62 }
 0x24c   :  { %v1561_v61 = vadd.f32 %v1560_v51, %v1530_v15  ;;  %v1583_v33 = vrot.slane %v1578_v49, %v1582_v45 }
 0x24d   :  { %vm1245_vm13 = vcmp.gt.f32.partialorder %v1203_v13, 0.0  ;;  %v1277_v56 = vmul.f32 0.2, %v1203_v13  ;;  %v1206_v25 = vadd.f32 %v1796_v11, %v884_v37 }
 0x24e   :  { %v1562_v18 = vadd.f32 %v1561_v61, %v1531_v50 }
 0x24f   :  { %v1309_v40 = vsel %vm1245_vm13, %v1203_v13, %v1277_v56  ;;  %vm1246_vm14 = vcmp.gt.f32.partialorder %v1206_v25, 0.0  ;;  %v1278_v57 = vmul.f32 0.2, %v1206_v25  ;;  %v1797_v38 = vpop.f32.mrb[40].mxu1 }
 0x250   :  { %v1533_v17 = vmul.f32 %v1488_v24, %v1309_v40  ;;  %v1798_v39 = vpop.f32.mrb[41].mxu1  ;;  %v1563_v28 = vadd.f32 %v1562_v18, %v1532_v4 }
 0x251   :  { %v1310_v47 = vsel %vm1246_vm14, %v1206_v25, %v1278_v57  ;;  %v1799_v1 = vadd.f32 %v1798_v39, %v1797_v38  ;;  %v1800_v21 = vpop.f32.mrb[42].mxu1 }
 0x252   :  { %v1534_v31 = vmul.f32 %v1493_v36, %v1310_v47  ;;  %v1801_v41 = vpop.f32.mrb[43].mxu1  ;;  %v1564_v60 = vadd.f32 %v1563_v28, %v1533_v17 }
 0x253   :  { %v1211_v14 = vadd.f32 %v1799_v1, %v889_v54  ;;  %v1802_v32 = vadd.f32 %v1801_v41, %v1800_v21 }
 0x254   :  { %v1565_v59 = vadd.f32 %v1564_v60, %v1534_v31 }
 0x255   :  { %vm1247_vm15 = vcmp.gt.f32.partialorder %v1211_v14, 0.0  ;;  %v1279_v34 = vmul.f32 0.2, %v1211_v14  ;;  %v1214_v46 = vadd.f32 %v1802_v32, %v894_v8 }
 0x257   :  { %v1311_v22 = vsel %vm1247_vm15, %v1211_v14, %v1279_v34  ;;  %vm1248_vm0 = vcmp.gt.f32.partialorder %v1214_v46, 0.0  ;;  %v1280_v26 = vmul.f32 0.2, %v1214_v46 }
 0x258   :  { %v1535_v12 = vmul.f32 %v1498_v16, %v1311_v22 }
 0x259   :  { %v1312_v9 = vsel %vm1248_vm0, %v1214_v46, %v1280_v26 }
 0x25a   :  { %v1566_v55 = vadd.f32 %v1565_v59, %v1535_v12  ;;  %v1536_v63 = vmul.f32 %v1503_v20, %v1312_v9 }
 0x25c   :  { %v1567_v44 = vadd.f32 %v1566_v55, %v1536_v63 }
 0x25e   :  { %v1568_v30 = vrot.slane %v1567_v44, 4 }
 0x260   :  { %v1569_v37 = vadd.f32 %v1568_v30, %v1567_v44 }
 0x262   :  { %v1570_v29 = vrot.slane %v1569_v37, 2 }
 0x264   :  { %v1571_v2 = vadd.f32 %v1570_v29, %v1569_v37 }
 0x266   :  { %v1572_v43 = vrot.slane %v1571_v2, 1 }
 0x268   :  { %v1573_v58 = vadd.f32 %v1572_v43, %v1571_v2 }
 0x26a   :  { %v1584_v19 = vadd.f32 %v1583_v33, %v1573_v58 }
 0x26c   :  { %v1672_v42 = vmul.f32 -1.442695, %v1584_v19 }
 0x26e   :  { %1925 = vpow2.f32 %v1672_v42 }
 0x278   :  { %v1926_v10 = vpop.eup %1925 }
 0x279   :  { %v1588_v7 = vadd.f32 1.0, %v1926_v10 }
 0x27b   :  { %1927 = vrcp.f32 %v1588_v7 }
 0x285   :  { %v1928_v3 = vpop.eup %1927 }
 0x286   :  { %1591 = vst [vmem:[#allocation3] sm:$0x1] %v1928_v3 }
 0x287   :  { %1940 = shalt.err (!%p1937_p4)
}
 0x288   :  { %s1941_s28 = scalar_lea.hbm %s2732_s7, 16 }
 0x289   :  { %p1942_p5 = scmp.ne.s32.totalorder %s2732_s7, %s1941_s28  ;;  %p1945_p6 = scmp.lt.u32.totalorder %s1941_s28, %s2732_s7 }
 0x28b   :  { %p1947_p7 = pnand %p1945_p6, %p1942_p5 }
 0x28d   :  { %1950 = shalt.err (!%p1947_p7)
}
 0x28e   :  { %1601 = dma.vmem_to_hbm [thread:$0]  %s1599_s23, 16, %s2732_s7, [#allocation4]  }
 0x28f   :  { %1951 = dma.done.wait [#allocation4], 16  }
 0x290   :  { %1952 = vsyncadd [#allocation4], 4294967280 }
 0x291   :  { %1605 = vsyncpa [#allocation4], 1 }

</bundles_post_ra>
